<compile_context>
chip_gen: v5e
topology: v5e:2x2
jax: 0.10.0
libtpu: 0.0.40
codegen_flags: <defaults>
</compile_context>

<pallas_src>
import functools

import jax
import jax.numpy as jnp
import numpy as np
from jax.experimental import pallas as pl
from jax.experimental.pallas import tpu as pltpu


# ----------------------------- fused Pallas kernel -----------------------------

def _lenet_moe_kernel(x_ref, w1_ref, epi1_ref, w2_ref, epi2_ref, rw_ref, rb_ref,
                      pooled_ref, logits_ref, idx_ref, scr1, scr2, scr_r):
    """conv1+ReLU+BN1+pool -> conv2+ReLU+BN2+pool -> router+argmax, Bt images/step."""
    kh = 5
    r1, half1 = scr1.shape            # Bt*32, 84
    r2, half2 = scr2.shape            # Bt*16, 80
    r3, n_exp = scr_r.shape           # Bt*8 , E
    m1, m2, m3 = r1 - (kh - 1), r2 - (kh - 1), r3 - (kh - 1)
    bt = r3 // 8

    def banded_matmul(x_bf16, w_ref, m_out):
        # Output-shifted banded conv: y[r] = sum_dh (x @ W[dh])[r + dh].
        # The bf16 activation is never sliced (only f32 outputs are shifted).
        acc = jnp.dot(x_bf16, w_ref[0], preferred_element_type=jnp.float32)[:m_out]
        for dh in range(1, kh):
            p = jnp.dot(x_bf16, w_ref[dh], preferred_element_type=jnp.float32)
            acc = acc + p[dh:dh + m_out]
        return acc

    def epilogue_wpool(acc, epi_ref, half):
        # bias + ReLU + folded inference-BatchNorm affine (all f32), then the
        # 2-wide W max-pool: output columns are parity-ordered over wo, so the
        # two pool inputs are the two contiguous halves of the lane dimension.
        epi = epi_ref[...]                                   # (3, nout) f32
        y = jnp.maximum(acc + epi[0:1, :], 0.0) * epi[1:2, :] + epi[2:3, :]
        return jnp.maximum(y[:, :half], y[:, half:])

    def hpool_via_scratch(y, scr, n_valid):
        # 2-wide H max-pool: store to VMEM scratch, read back with stride-2
        # (known-good lowering for the sublane compaction).  The kh-1 pad rows
        # are zeroed so junk rows stay deterministic; they are never consumed
        # by any valid output.
        pad = scr.shape[0] - n_valid
        scr[pl.ds(0, n_valid), :] = y
        scr[pl.ds(n_valid, pad), :] = jnp.zeros((pad, scr.shape[1]), jnp.float32)
        n_out = scr.shape[0] // 2
        return jnp.maximum(scr[pl.ds(0, n_out, stride=2), :],
                           scr[pl.ds(1, n_out, stride=2), :])

    # ---- stage 1: conv1 -> bias/ReLU/BN1 -> 2x2 maxpool ---------------------
    acc1 = banded_matmul(x_ref[...], w1_ref, m1)                      # (m1, 168) f32
    x2 = hpool_via_scratch(epilogue_wpool(acc1, epi1_ref, half1), scr1, m1)   # (r2, 84)

    # ---- stage 2: conv2 -> bias/ReLU/BN2 -> 2x2 maxpool ---------------------
    acc2 = banded_matmul(x2.astype(jnp.bfloat16), w2_ref, m2)         # (m2, 160) f32
    pooled = hpool_via_scratch(epilogue_wpool(acc2, epi2_ref, half2), scr2, m2)  # (r3, 80)
    pooled_ref[...] = pooled

    # ---- router (banded over the 5 pooled rows per image) + argmax ----------
    acc_r = banded_matmul(pooled.astype(jnp.bfloat16), rw_ref, m3)    # (m3, E) f32
    scr_r[pl.ds(0, m3), :] = acc_r
    logits = scr_r[pl.ds(0, bt, stride=8), :] + rb_ref[...]           # (bt, E)
    logits_ref[...] = logits
    mx = jnp.max(logits, axis=1, keepdims=True)
    lane = jax.lax.broadcasted_iota(jnp.int32, logits.shape, 1)
    idx_ref[...] = jnp.min(jnp.where(logits == mx, lane, n_exp),
                           axis=1, keepdims=True).astype(jnp.int32)   # first max index


# ----------------------------- pallas_call wrapper -----------------------------

def _const_spec(arr):
    nd = arr.ndim
    return pl.BlockSpec(arr.shape, lambda i, nd=nd: (0,) * nd)


def lenet_moe_fused(x2d, kp, bt):
    """x2d: (Bp*32, W*Cin) bf16 flattened NHWC rows, Bp % bt == 0."""
    rows, wc = x2d.shape
    bp = rows // 32
    assert bp % bt == 0
    half1 = kp["w1"].shape[2] // 2                 # 84
    half2 = kp["w2"].shape[2] // 2                 # 80
    num_experts = kp["rb"].shape[1]
    r1, r2, r3 = bt * 32, bt * 16, bt * 8

    return pl.pallas_call(
        _lenet_moe_kernel,
        out_shape=(
            jax.ShapeDtypeStruct((bp * 8, half2), jnp.float32),   # pooled HWC features
            jax.ShapeDtypeStruct((bp, num_experts), jnp.float32),
            jax.ShapeDtypeStruct((bp, 1), jnp.int32),
        ),
        grid=(bp // bt,),
        in_specs=[
            pl.BlockSpec((r1, wc), lambda i: (i, 0)),             # Bt-image row slab
            _const_spec(kp["w1"]),                                # banded conv1 weights
            _const_spec(kp["epi1"]),                              # conv1 bias/BN scale/BN shift
            _const_spec(kp["w2"]),
            _const_spec(kp["epi2"]),
            _const_spec(kp["rw"]),                                # router weight (regrouped)
            _const_spec(kp["rb"]),                                # router bias
        ],
        out_specs=(
            pl.BlockSpec((r3, half2), lambda i: (i, 0)),
            pl.BlockSpec((bt, num_experts), lambda i: (i, 0)),
            pl.BlockSpec((bt, 1), lambda i: (i, 0)),
        ),
        scratch_shapes=[pltpu.VMEM((r1, half1), jnp.float32),
                        pltpu.VMEM((r2, half2), jnp.float32),
                        pltpu.VMEM((r3, num_experts), jnp.float32)],
        compiler_params=pltpu.CompilerParams(dimension_semantics=("parallel",)),
    )(x2d, kp["w1"], kp["epi1"], kp["w2"], kp["epi2"], kp["rw"], kp["rb"])


@functools.partial(jax.jit, static_argnames=("bt",))
def moe_forward(x_nchw, kp, bt=16):
    B, C, H, W = x_nchw.shape
    assert (C, H, W) == (3, 32, 32), "LeNet feature extractor expects 3x32x32 input"
    bt = min(bt, B)
    bp = ((B + bt - 1) // bt) * bt
    if bp != B:
        x_nchw = jnp.pad(x_nchw, ((0, bp - B), (0, 0), (0, 0), (0, 0)))
    # NCHW -> NHWC, flattened to (Bp*H, W*Cin) rows feeding the banded matmuls.
    x2d = jnp.transpose(x_nchw, (0, 2, 3, 1)).reshape(bp * H, W * C).astype(jnp.bfloat16)

    pooled, logits, idx = lenet_moe_fused(x2d, kp, bt)

    # pooled rows per image: 8 (rows 5..7 are junk from the batch folding);
    # columns are (w*16 + c).  Emit features in PyTorch NCHW flatten order.
    hp = 5
    c2 = pooled.shape[1] // hp                                  # 16
    feats = pooled.reshape(bp, 8, hp, c2)[:, :hp]               # (bp, 5, 5, 16)  (h, w, c)
    feats = jnp.transpose(feats, (0, 3, 1, 2)).reshape(bp, -1)  # (bp, 400) NCHW flatten
    return feats[:B], logits[:B], idx[:B, 0]


# ----------------------------- host-side weight prep -----------------------------

def bn_affine(gamma, beta, mean, var, eps=1e-5):
    scale = gamma / jnp.sqrt(var + eps)
    return scale, beta - mean * scale


def make_banded_conv_weights(w, in_width):
    """Conv weight (Cout,Cin,5,5) -> (5, in_width*Cin, Wo*Cout) banded matrices.

    Row index = (input x-position)*Cin + ci  (matches the (H, W*Cin) activation rows).
    Output columns are parity-ordered over the output x-position wo:
        col(wo, co) = (wo % 2) * (Wo//2)*Cout + (wo // 2)*Cout + co
    so the 2-wide max-pool along W becomes max(y[:, :half], y[:, half:]).
    """
    w = np.asarray(w, np.float32)
    cout, cin, kh, kw = w.shape
    wo_total = in_width - kw + 1
    half = (wo_total // 2) * cout
    wb = np.zeros((kh, in_width * cin, wo_total * cout), np.float32)
    for dh in range(kh):
        for dw in range(kw):
            blk = w[:, :, dh, dw].T                              # (Cin, Cout)
            for wo in range(wo_total):
                r0 = (wo + dw) * cin
                c0 = (wo % 2) * half + (wo // 2) * cout
                wb[dh, r0:r0 + cin, c0:c0 + cout] = blk
    return wb


def prepare_params(params):
    """Pre-reorder the PyTorch-layout parameters into kernel-ready tensors (done once)."""
    s1, t1 = bn_affine(params["bn1_gamma"], params["bn1_beta"],
                       params["bn1_mean"], params["bn1_var"])
    s2, t2 = bn_affine(params["bn2_gamma"], params["bn2_beta"],
                       params["bn2_mean"], params["bn2_var"])
    wo1, wo2 = 28, 10                                            # conv output widths
    num_experts = params["router_w"].shape[0]

    def pack_epi(bias, scale, shift, wo):
        # One (3, nout) tensor per conv: rows = bias / BN scale / BN shift,
        # tiled per output column (col % Cout == channel for all parities).
        return jnp.stack([jnp.tile(bias.astype(jnp.float32), wo),
                          jnp.tile(scale.astype(jnp.float32), wo),
                          jnp.tile(shift.astype(jnp.float32), wo)], axis=0)

    # Router weight (E, 400) over NCHW index c*25+h*5+w  ->  (h, w*16+c, e).
    rw = np.asarray(params["router_w"], np.float32).reshape(num_experts, 16, 5, 5)
    rw = np.transpose(rw, (2, 3, 1, 0)).reshape(5, 80, num_experts)
    return {
        "w1": jnp.asarray(make_banded_conv_weights(params["conv1_w"], 32), jnp.bfloat16),
        "epi1": pack_epi(params["conv1_b"], s1, t1, wo1),
        "w2": jnp.asarray(make_banded_conv_weights(params["conv2_w"], 14), jnp.bfloat16),
        "epi2": pack_epi(params["conv2_b"], s2, t2, wo2),
        "rw": jnp.asarray(rw, jnp.bfloat16),
        "rb": params["router_b"].astype(jnp.float32)[None, :],
    }


def init_params(key, num_experts=3):
    ks = jax.random.split(key, 14)
    p = {}
    p["conv1_w"] = 0.1 * jax.random.normal(ks[0], (6, 3, 5, 5), jnp.float32)
    p["conv1_b"] = 0.05 * jax.random.normal(ks[1], (6,), jnp.float32)
    p["bn1_gamma"] = 1.0 + 0.1 * jax.random.normal(ks[2], (6,), jnp.float32)
    p["bn1_beta"] = 0.1 * jax.random.normal(ks[3], (6,), jnp.float32)
    p["bn1_mean"] = 0.1 * jax.random.normal(ks[4], (6,), jnp.float32)
    p["bn1_var"] = 0.5 + 0.5 * jnp.abs(jax.random.normal(ks[5], (6,), jnp.float32))
    p["conv2_w"] = 0.1 * jax.random.normal(ks[6], (16, 6, 5, 5), jnp.float32)
    p["conv2_b"] = 0.05 * jax.random.normal(ks[7], (16,), jnp.float32)
    p["bn2_gamma"] = 1.0 + 0.1 * jax.random.normal(ks[8], (16,), jnp.float32)
    p["bn2_beta"] = 0.1 * jax.random.normal(ks[9], (16,), jnp.float32)
    p["bn2_mean"] = 0.1 * jax.random.normal(ks[10], (16,), jnp.float32)
    p["bn2_var"] = 0.5 + 0.5 * jnp.abs(jax.random.normal(ks[11], (16,), jnp.float32))
    p["router_w"] = 0.05 * jax.random.normal(ks[12], (num_experts, 400), jnp.float32)
    p["router_b"] = 0.05 * jax.random.normal(ks[13], (num_experts,), jnp.float32)
    return p


# ----------------------------- pure-JAX reference -----------------------------

def moe_forward_ref(x_nchw, params):
    def conv_valid(x, w, b):
        y = jax.lax.conv_general_dilated(
            x, w, window_strides=(1, 1), padding="VALID",
            dimension_numbers=("NCHW", "OIHW", "NCHW"))
        return y + b[None, :, None, None]

    def pool2(x):
        B, C, H, W = x.shape
        return jnp.max(x.reshape(B, C, H // 2, 2, W // 2, 2), axis=(3, 5))

    s1, t1 = bn_affine(params["bn1_gamma"], params["bn1_beta"],
                       params["bn1_mean"], params["bn1_var"])
    s2, t2 = bn_affine(params["bn2_gamma"], params["bn2_beta"],
                       params["bn2_mean"], params["bn2_var"])
    y = jnp.maximum(conv_valid(x_nchw, params["conv1_w"], params["conv1_b"]), 0.0)
    y = pool2(y * s1[None, :, None, None] + t1[None, :, None, None])
    y = jnp.maximum(conv_valid(y, params["conv2_w"], params["conv2_b"]), 0.0)
    y = pool2(y * s2[None, :, None, None] + t2[None, :, None, None])
    feats = y.reshape(y.shape[0], -1)                       # NCHW flatten, like x.view(B,-1)
    logits = feats @ params["router_w"].T + params["router_b"]
    idx = jnp.argmax(logits, axis=1).astype(jnp.int32)
    return feats, logits, idx


# ----------------------------- main -----------------------------

if __name__ == "__main__":
    key = jax.random.PRNGKey(0)
    k_x, k_p, k_x2 = jax.random.split(key, 3)

    params = init_params(k_p, num_experts=3)
    kp = prepare_params(params)

    def check(x, bt):
        feats, logits, idx = moe_forward(x, kp, bt=bt)
        jax.block_until_ready((feats, logits, idx))
        feats_r, logits_r, idx_r = moe_forward_ref(x, params)
        # bf16 matmul inputs (f32 accumulation) -> compare against the f32
        # reference with a tolerance covering bfloat16 rounding.
        np.testing.assert_allclose(np.asarray(feats), np.asarray(feats_r),
                                   rtol=3e-2, atol=3e-2)
        np.testing.assert_allclose(np.asarray(logits), np.asarray(logits_r),
                                   rtol=4e-2, atol=4e-2)
        # argmax must be exactly consistent with the logits the kernel produced.
        assert np.array_equal(np.asarray(idx),
                              np.argmax(np.asarray(logits), axis=1).astype(np.int32))
        B = x.shape[0]
        assert feats.shape == (B, 400) and logits.shape == (B, 3) and idx.shape == (B,)

    # Small deterministic example (spec shape): batch=2, 3x32x32 -> feature_dim=400.
    x_small = jax.random.normal(k_x, (2, 3, 32, 32), jnp.float32)
    check(x_small, bt=16)           # bt clamps to 2, single grid step

    # Larger batch exercising the batch-tiled multi-step grid + batch padding.
    x_big = jax.random.normal(k_x2, (33, 3, 32, 32), jnp.float32)
    check(x_big, bt=16)             # padded to 48 images, grid=(3,)

    print("KERNEL_OK")
</pallas_src>

<mosaic_0001>
module attributes {stable_mosaic.version = 11 : i64} {
  func.func @_lenet_moe_kernel(%arg0: i32, %arg1: memref<64x96xbf16, #tpu.memory_space<vmem>>, %arg2: memref<5x96x168xbf16, #tpu.memory_space<vmem>>, %arg3: memref<3x168xf32, #tpu.memory_space<vmem>>, %arg4: memref<5x84x160xbf16, #tpu.memory_space<vmem>>, %arg5: memref<3x160xf32, #tpu.memory_space<vmem>>, %arg6: memref<5x80x3xbf16, #tpu.memory_space<vmem>>, %arg7: memref<1x3xf32, #tpu.memory_space<vmem>>, %arg8: memref<16x80xf32, #tpu.memory_space<vmem>>, %arg9: memref<2x3xf32, #tpu.memory_space<vmem>>, %arg10: memref<2x1xi32, #tpu.memory_space<vmem>>, %arg11: memref<64x84xf32, #tpu.memory_space<vmem>>, %arg12: memref<32x80xf32, #tpu.memory_space<vmem>>, %arg13: memref<16x3xf32, #tpu.memory_space<vmem>>) attributes {dimension_semantics = [#tpu.dimension_semantics<parallel>], iteration_bounds = array<i64: 1>, scalar_prefetch = 0 : i64, scratch_operands = 3 : i64, tpu.core_type = #tpu.core_type<tc>, window_params = [{transform_indices = @transform_0, window_bounds = array<i64: 64, 96>}, {pipeline_mode = #tpu.pipeline_mode<synchronous>, transform_indices = @transform_1, window_bounds = array<i64: 5, 96, 168>}, {pipeline_mode = #tpu.pipeline_mode<synchronous>, transform_indices = @transform_2, window_bounds = array<i64: 3, 168>}, {pipeline_mode = #tpu.pipeline_mode<synchronous>, transform_indices = @transform_3, window_bounds = array<i64: 5, 84, 160>}, {pipeline_mode = #tpu.pipeline_mode<synchronous>, transform_indices = @transform_4, window_bounds = array<i64: 3, 160>}, {pipeline_mode = #tpu.pipeline_mode<synchronous>, transform_indices = @transform_5, window_bounds = array<i64: 5, 80, 3>}, {pipeline_mode = #tpu.pipeline_mode<synchronous>, transform_indices = @transform_6, window_bounds = array<i64: 1, 3>}, {transform_indices = @transform_7, window_bounds = array<i64: 16, 80>}, {transform_indices = @transform_8, window_bounds = array<i64: 2, 3>}, {transform_indices = @transform_9, window_bounds = array<i64: 2, 1>}]} {
    %c0 = arith.constant 0 : index
    %c0_0 = arith.constant 0 : index
    %0 = vector.load %arg1[%c0, %c0_0] : memref<64x96xbf16, #tpu.memory_space<vmem>>, vector<64x96xbf16>
    %c0_1 = arith.constant 0 : index
    %c0_2 = arith.constant 0 : index
    %c0_3 = arith.constant 0 : index
    %1 = vector.load %arg2[%c0_1, %c0_2, %c0_3] : memref<5x96x168xbf16, #tpu.memory_space<vmem>>, vector<1x96x168xbf16>
    %2 = vector.shape_cast %1 : vector<1x96x168xbf16> to vector<96x168xbf16>
    %cst = arith.constant dense<0.000000e+00> : vector<64x168xf32>
    %3 = tpu.matmul %0, %2, %cst {dimension_numbers = #tpu.dot_dimension_numbers<[1], [0], [0], [1], [0, 0, 1, 1], [], []>} : vector<64x96xbf16>, vector<96x168xbf16>, vector<64x168xf32> -> vector<64x168xf32>
    %4 = vector.extract_strided_slice %3 {offsets = [0, 0], sizes = [60, 168], strides = [1, 1]} : vector<64x168xf32> to vector<60x168xf32>
    %c1 = arith.constant 1 : index
    %c0_4 = arith.constant 0 : index
    %c0_5 = arith.constant 0 : index
    %5 = vector.load %arg2[%c1, %c0_4, %c0_5] : memref<5x96x168xbf16, #tpu.memory_space<vmem>>, vector<1x96x168xbf16>
    %6 = vector.shape_cast %5 : vector<1x96x168xbf16> to vector<96x168xbf16>
    %cst_6 = arith.constant dense<0.000000e+00> : vector<64x168xf32>
    %7 = tpu.matmul %0, %6, %cst_6 {dimension_numbers = #tpu.dot_dimension_numbers<[1], [0], [0], [1], [0, 0, 1, 1], [], []>} : vector<64x96xbf16>, vector<96x168xbf16>, vector<64x168xf32> -> vector<64x168xf32>
    %8 = vector.extract_strided_slice %7 {offsets = [1, 0], sizes = [60, 168], strides = [1, 1]} : vector<64x168xf32> to vector<60x168xf32>
    %9 = arith.addf %4, %8 : vector<60x168xf32>
    %c2 = arith.constant 2 : index
    %c0_7 = arith.constant 0 : index
    %c0_8 = arith.constant 0 : index
    %10 = vector.load %arg2[%c2, %c0_7, %c0_8] : memref<5x96x168xbf16, #tpu.memory_space<vmem>>, vector<1x96x168xbf16>
    %11 = vector.shape_cast %10 : vector<1x96x168xbf16> to vector<96x168xbf16>
    %cst_9 = arith.constant dense<0.000000e+00> : vector<64x168xf32>
    %12 = tpu.matmul %0, %11, %cst_9 {dimension_numbers = #tpu.dot_dimension_numbers<[1], [0], [0], [1], [0, 0, 1, 1], [], []>} : vector<64x96xbf16>, vector<96x168xbf16>, vector<64x168xf32> -> vector<64x168xf32>
    %13 = vector.extract_strided_slice %12 {offsets = [2, 0], sizes = [60, 168], strides = [1, 1]} : vector<64x168xf32> to vector<60x168xf32>
    %14 = arith.addf %9, %13 : vector<60x168xf32>
    %c3 = arith.constant 3 : index
    %c0_10 = arith.constant 0 : index
    %c0_11 = arith.constant 0 : index
    %15 = vector.load %arg2[%c3, %c0_10, %c0_11] : memref<5x96x168xbf16, #tpu.memory_space<vmem>>, vector<1x96x168xbf16>
    %16 = vector.shape_cast %15 : vector<1x96x168xbf16> to vector<96x168xbf16>
    %cst_12 = arith.constant dense<0.000000e+00> : vector<64x168xf32>
    %17 = tpu.matmul %0, %16, %cst_12 {dimension_numbers = #tpu.dot_dimension_numbers<[1], [0], [0], [1], [0, 0, 1, 1], [], []>} : vector<64x96xbf16>, vector<96x168xbf16>, vector<64x168xf32> -> vector<64x168xf32>
    %18 = vector.extract_strided_slice %17 {offsets = [3, 0], sizes = [60, 168], strides = [1, 1]} : vector<64x168xf32> to vector<60x168xf32>
    %19 = arith.addf %14, %18 : vector<60x168xf32>
    %c4 = arith.constant 4 : index
    %c0_13 = arith.constant 0 : index
    %c0_14 = arith.constant 0 : index
    %20 = vector.load %arg2[%c4, %c0_13, %c0_14] : memref<5x96x168xbf16, #tpu.memory_space<vmem>>, vector<1x96x168xbf16>
    %21 = vector.shape_cast %20 : vector<1x96x168xbf16> to vector<96x168xbf16>
    %cst_15 = arith.constant dense<0.000000e+00> : vector<64x168xf32>
    %22 = tpu.matmul %0, %21, %cst_15 {dimension_numbers = #tpu.dot_dimension_numbers<[1], [0], [0], [1], [0, 0, 1, 1], [], []>} : vector<64x96xbf16>, vector<96x168xbf16>, vector<64x168xf32> -> vector<64x168xf32>
    %23 = vector.extract_strided_slice %22 {offsets = [4, 0], sizes = [60, 168], strides = [1, 1]} : vector<64x168xf32> to vector<60x168xf32>
    %24 = arith.addf %19, %23 : vector<60x168xf32>
    %c0_16 = arith.constant 0 : index
    %c0_17 = arith.constant 0 : index
    %25 = vector.load %arg3[%c0_16, %c0_17] : memref<3x168xf32, #tpu.memory_space<vmem>>, vector<3x168xf32>
    %26 = vector.extract_strided_slice %25 {offsets = [0, 0], sizes = [1, 168], strides = [1, 1]} : vector<3x168xf32> to vector<1x168xf32>
    %27 = vector.broadcast %26 : vector<1x168xf32> to vector<60x168xf32>
    %28 = arith.addf %24, %27 : vector<60x168xf32>
    %cst_18 = arith.constant 0.000000e+00 : f32
    %29 = vector.broadcast %cst_18 : f32 to vector<60x168xf32>
    %30 = arith.maximumf %28, %29 : vector<60x168xf32>
    %31 = vector.extract_strided_slice %25 {offsets = [1, 0], sizes = [1, 168], strides = [1, 1]} : vector<3x168xf32> to vector<1x168xf32>
    %32 = vector.broadcast %31 : vector<1x168xf32> to vector<60x168xf32>
    %33 = arith.mulf %30, %32 : vector<60x168xf32>
    %34 = vector.extract_strided_slice %25 {offsets = [2, 0], sizes = [1, 168], strides = [1, 1]} : vector<3x168xf32> to vector<1x168xf32>
    %35 = vector.broadcast %34 : vector<1x168xf32> to vector<60x168xf32>
    %36 = arith.addf %33, %35 : vector<60x168xf32>
    %37 = vector.extract_strided_slice %36 {offsets = [0, 0], sizes = [60, 84], strides = [1, 1]} : vector<60x168xf32> to vector<60x84xf32>
    %38 = vector.extract_strided_slice %36 {offsets = [0, 84], sizes = [60, 84], strides = [1, 1]} : vector<60x168xf32> to vector<60x84xf32>
    %39 = arith.maximumf %37, %38 : vector<60x84xf32>
    %c0_19 = arith.constant 0 : index
    %c0_20 = arith.constant 0 : index
    %40 = vector.load %arg11[%c0_19, %c0_20] : memref<64x84xf32, #tpu.memory_space<vmem>>, vector<60x84xf32>
    tpu.vector_store %arg11[%c0_19, %c0_20], %39 {strides = array<i32>} : memref<64x84xf32, #tpu.memory_space<vmem>>, vector<60x84xf32>,
    %cst_21 = arith.constant 0.000000e+00 : f32
    %41 = vector.broadcast %cst_21 : f32 to vector<4x84xf32>
    %c60 = arith.constant 60 : index
    %c0_22 = arith.constant 0 : index
    %42 = vector.load %arg11[%c60, %c0_22] : memref<64x84xf32, #tpu.memory_space<vmem>>, vector<4x84xf32>
    tpu.vector_store %arg11[%c60, %c0_22], %41 {strides = array<i32>} : memref<64x84xf32, #tpu.memory_space<vmem>>, vector<4x84xf32>,
    %c0_23 = arith.constant 0 : index
    %c0_24 = arith.constant 0 : index
    %43 = tpu.strided_load %arg11[%c0_23, %c0_24] {strides = array<i32: 2, 1>} : memref<64x84xf32, #tpu.memory_space<vmem>>, vector<32x84xf32>
    %c1_25 = arith.constant 1 : index
    %c0_26 = arith.constant 0 : index
    %44 = tpu.strided_load %arg11[%c1_25, %c0_26] {strides = array<i32: 2, 1>} : memref<64x84xf32, #tpu.memory_space<vmem>>, vector<32x84xf32>
    %45 = arith.maximumf %43, %44 : vector<32x84xf32>
    %46 = arith.truncf %45 : vector<32x84xf32> to vector<32x84xbf16>
    %c0_27 = arith.constant 0 : index
    %c0_28 = arith.constant 0 : index
    %c0_29 = arith.constant 0 : index
    %47 = vector.load %arg4[%c0_27, %c0_28, %c0_29] : memref<5x84x160xbf16, #tpu.memory_space<vmem>>, vector<1x84x160xbf16>
    %48 = vector.shape_cast %47 : vector<1x84x160xbf16> to vector<84x160xbf16>
    %cst_30 = arith.constant dense<0.000000e+00> : vector<32x160xf32>
    %49 = tpu.matmul %46, %48, %cst_30 {dimension_numbers = #tpu.dot_dimension_numbers<[1], [0], [0], [1], [0, 0, 1, 1], [], []>} : vector<32x84xbf16>, vector<84x160xbf16>, vector<32x160xf32> -> vector<32x160xf32>
    %50 = vector.extract_strided_slice %49 {offsets = [0, 0], sizes = [28, 160], strides = [1, 1]} : vector<32x160xf32> to vector<28x160xf32>
    %c1_31 = arith.constant 1 : index
    %c0_32 = arith.constant 0 : index
    %c0_33 = arith.constant 0 : index
    %51 = vector.load %arg4[%c1_31, %c0_32, %c0_33] : memref<5x84x160xbf16, #tpu.memory_space<vmem>>, vector<1x84x160xbf16>
    %52 = vector.shape_cast %51 : vector<1x84x160xbf16> to vector<84x160xbf16>
    %cst_34 = arith.constant dense<0.000000e+00> : vector<32x160xf32>
    %53 = tpu.matmul %46, %52, %cst_34 {dimension_numbers = #tpu.dot_dimension_numbers<[1], [0], [0], [1], [0, 0, 1, 1], [], []>} : vector<32x84xbf16>, vector<84x160xbf16>, vector<32x160xf32> -> vector<32x160xf32>
    %54 = vector.extract_strided_slice %53 {offsets = [1, 0], sizes = [28, 160], strides = [1, 1]} : vector<32x160xf32> to vector<28x160xf32>
    %55 = arith.addf %50, %54 : vector<28x160xf32>
    %c2_35 = arith.constant 2 : index
    %c0_36 = arith.constant 0 : index
    %c0_37 = arith.constant 0 : index
    %56 = vector.load %arg4[%c2_35, %c0_36, %c0_37] : memref<5x84x160xbf16, #tpu.memory_space<vmem>>, vector<1x84x160xbf16>
    %57 = vector.shape_cast %56 : vector<1x84x160xbf16> to vector<84x160xbf16>
    %cst_38 = arith.constant dense<0.000000e+00> : vector<32x160xf32>
    %58 = tpu.matmul %46, %57, %cst_38 {dimension_numbers = #tpu.dot_dimension_numbers<[1], [0], [0], [1], [0, 0, 1, 1], [], []>} : vector<32x84xbf16>, vector<84x160xbf16>, vector<32x160xf32> -> vector<32x160xf32>
    %59 = vector.extract_strided_slice %58 {offsets = [2, 0], sizes = [28, 160], strides = [1, 1]} : vector<32x160xf32> to vector<28x160xf32>
    %60 = arith.addf %55, %59 : vector<28x160xf32>
    %c3_39 = arith.constant 3 : index
    %c0_40 = arith.constant 0 : index
    %c0_41 = arith.constant 0 : index
    %61 = vector.load %arg4[%c3_39, %c0_40, %c0_41] : memref<5x84x160xbf16, #tpu.memory_space<vmem>>, vector<1x84x160xbf16>
    %62 = vector.shape_cast %61 : vector<1x84x160xbf16> to vector<84x160xbf16>
    %cst_42 = arith.constant dense<0.000000e+00> : vector<32x160xf32>
    %63 = tpu.matmul %46, %62, %cst_42 {dimension_numbers = #tpu.dot_dimension_numbers<[1], [0], [0], [1], [0, 0, 1, 1], [], []>} : vector<32x84xbf16>, vector<84x160xbf16>, vector<32x160xf32> -> vector<32x160xf32>
    %64 = vector.extract_strided_slice %63 {offsets = [3, 0], sizes = [28, 160], strides = [1, 1]} : vector<32x160xf32> to vector<28x160xf32>
    %65 = arith.addf %60, %64 : vector<28x160xf32>
    %c4_43 = arith.constant 4 : index
    %c0_44 = arith.constant 0 : index
    %c0_45 = arith.constant 0 : index
    %66 = vector.load %arg4[%c4_43, %c0_44, %c0_45] : memref<5x84x160xbf16, #tpu.memory_space<vmem>>, vector<1x84x160xbf16>
    %67 = vector.shape_cast %66 : vector<1x84x160xbf16> to vector<84x160xbf16>
    %cst_46 = arith.constant dense<0.000000e+00> : vector<32x160xf32>
    %68 = tpu.matmul %46, %67, %cst_46 {dimension_numbers = #tpu.dot_dimension_numbers<[1], [0], [0], [1], [0, 0, 1, 1], [], []>} : vector<32x84xbf16>, vector<84x160xbf16>, vector<32x160xf32> -> vector<32x160xf32>
    %69 = vector.extract_strided_slice %68 {offsets = [4, 0], sizes = [28, 160], strides = [1, 1]} : vector<32x160xf32> to vector<28x160xf32>
    %70 = arith.addf %65, %69 : vector<28x160xf32>
    %c0_47 = arith.constant 0 : index
    %c0_48 = arith.constant 0 : index
    %71 = vector.load %arg5[%c0_47, %c0_48] : memref<3x160xf32, #tpu.memory_space<vmem>>, vector<3x160xf32>
    %72 = vector.extract_strided_slice %71 {offsets = [0, 0], sizes = [1, 160], strides = [1, 1]} : vector<3x160xf32> to vector<1x160xf32>
    %73 = vector.broadcast %72 : vector<1x160xf32> to vector<28x160xf32>
    %74 = arith.addf %70, %73 : vector<28x160xf32>
    %cst_49 = arith.constant 0.000000e+00 : f32
    %75 = vector.broadcast %cst_49 : f32 to vector<28x160xf32>
    %76 = arith.maximumf %74, %75 : vector<28x160xf32>
    %77 = vector.extract_strided_slice %71 {offsets = [1, 0], sizes = [1, 160], strides = [1, 1]} : vector<3x160xf32> to vector<1x160xf32>
    %78 = vector.broadcast %77 : vector<1x160xf32> to vector<28x160xf32>
    %79 = arith.mulf %76, %78 : vector<28x160xf32>
    %80 = vector.extract_strided_slice %71 {offsets = [2, 0], sizes = [1, 160], strides = [1, 1]} : vector<3x160xf32> to vector<1x160xf32>
    %81 = vector.broadcast %80 : vector<1x160xf32> to vector<28x160xf32>
    %82 = arith.addf %79, %81 : vector<28x160xf32>
    %83 = vector.extract_strided_slice %82 {offsets = [0, 0], sizes = [28, 80], strides = [1, 1]} : vector<28x160xf32> to vector<28x80xf32>
    %84 = vector.extract_strided_slice %82 {offsets = [0, 80], sizes = [28, 80], strides = [1, 1]} : vector<28x160xf32> to vector<28x80xf32>
    %85 = arith.maximumf %83, %84 : vector<28x80xf32>
    %c0_50 = arith.constant 0 : index
    %c0_51 = arith.constant 0 : index
    %86 = vector.load %arg12[%c0_50, %c0_51] : memref<32x80xf32, #tpu.memory_space<vmem>>, vector<28x80xf32>
    tpu.vector_store %arg12[%c0_50, %c0_51], %85 {strides = array<i32>} : memref<32x80xf32, #tpu.memory_space<vmem>>, vector<28x80xf32>,
    %cst_52 = arith.constant 0.000000e+00 : f32
    %87 = vector.broadcast %cst_52 : f32 to vector<4x80xf32>
    %c28 = arith.constant 28 : index
    %c0_53 = arith.constant 0 : index
    %88 = vector.load %arg12[%c28, %c0_53] : memref<32x80xf32, #tpu.memory_space<vmem>>, vector<4x80xf32>
    tpu.vector_store %arg12[%c28, %c0_53], %87 {strides = array<i32>} : memref<32x80xf32, #tpu.memory_space<vmem>>, vector<4x80xf32>,
    %c0_54 = arith.constant 0 : index
    %c0_55 = arith.constant 0 : index
    %89 = tpu.strided_load %arg12[%c0_54, %c0_55] {strides = array<i32: 2, 1>} : memref<32x80xf32, #tpu.memory_space<vmem>>, vector<16x80xf32>
    %c1_56 = arith.constant 1 : index
    %c0_57 = arith.constant 0 : index
    %90 = tpu.strided_load %arg12[%c1_56, %c0_57] {strides = array<i32: 2, 1>} : memref<32x80xf32, #tpu.memory_space<vmem>>, vector<16x80xf32>
    %91 = arith.maximumf %89, %90 : vector<16x80xf32>
    %c0_58 = arith.constant 0 : index
    %c0_59 = arith.constant 0 : index
    %92 = vector.load %arg8[%c0_58, %c0_59] : memref<16x80xf32, #tpu.memory_space<vmem>>, vector<16x80xf32>
    tpu.vector_store %arg8[%c0_58, %c0_59], %91 {strides = array<i32>} : memref<16x80xf32, #tpu.memory_space<vmem>>, vector<16x80xf32>,
    %93 = arith.truncf %91 : vector<16x80xf32> to vector<16x80xbf16>
    %c0_60 = arith.constant 0 : index
    %c0_61 = arith.constant 0 : index
    %c0_62 = arith.constant 0 : index
    %94 = vector.load %arg6[%c0_60, %c0_61, %c0_62] : memref<5x80x3xbf16, #tpu.memory_space<vmem>>, vector<1x80x3xbf16>
    %95 = vector.shape_cast %94 : vector<1x80x3xbf16> to vector<80x3xbf16>
    %cst_63 = arith.constant dense<0.000000e+00> : vector<16x3xf32>
    %96 = tpu.matmul %93, %95, %cst_63 {dimension_numbers = #tpu.dot_dimension_numbers<[1], [0], [0], [1], [0, 0, 1, 1], [], []>} : vector<16x80xbf16>, vector<80x3xbf16>, vector<16x3xf32> -> vector<16x3xf32>
    %97 = vector.extract_strided_slice %96 {offsets = [0, 0], sizes = [12, 3], strides = [1, 1]} : vector<16x3xf32> to vector<12x3xf32>
    %c1_64 = arith.constant 1 : index
    %c0_65 = arith.constant 0 : index
    %c0_66 = arith.constant 0 : index
    %98 = vector.load %arg6[%c1_64, %c0_65, %c0_66] : memref<5x80x3xbf16, #tpu.memory_space<vmem>>, vector<1x80x3xbf16>
    %99 = vector.shape_cast %98 : vector<1x80x3xbf16> to vector<80x3xbf16>
    %cst_67 = arith.constant dense<0.000000e+00> : vector<16x3xf32>
    %100 = tpu.matmul %93, %99, %cst_67 {dimension_numbers = #tpu.dot_dimension_numbers<[1], [0], [0], [1], [0, 0, 1, 1], [], []>} : vector<16x80xbf16>, vector<80x3xbf16>, vector<16x3xf32> -> vector<16x3xf32>
    %101 = vector.extract_strided_slice %100 {offsets = [1, 0], sizes = [12, 3], strides = [1, 1]} : vector<16x3xf32> to vector<12x3xf32>
    %102 = arith.addf %97, %101 : vector<12x3xf32>
    %c2_68 = arith.constant 2 : index
    %c0_69 = arith.constant 0 : index
    %c0_70 = arith.constant 0 : index
    %103 = vector.load %arg6[%c2_68, %c0_69, %c0_70] : memref<5x80x3xbf16, #tpu.memory_space<vmem>>, vector<1x80x3xbf16>
    %104 = vector.shape_cast %103 : vector<1x80x3xbf16> to vector<80x3xbf16>
    %cst_71 = arith.constant dense<0.000000e+00> : vector<16x3xf32>
    %105 = tpu.matmul %93, %104, %cst_71 {dimension_numbers = #tpu.dot_dimension_numbers<[1], [0], [0], [1], [0, 0, 1, 1], [], []>} : vector<16x80xbf16>, vector<80x3xbf16>, vector<16x3xf32> -> vector<16x3xf32>
    %106 = vector.extract_strided_slice %105 {offsets = [2, 0], sizes = [12, 3], strides = [1, 1]} : vector<16x3xf32> to vector<12x3xf32>
    %107 = arith.addf %102, %106 : vector<12x3xf32>
    %c3_72 = arith.constant 3 : index
    %c0_73 = arith.constant 0 : index
    %c0_74 = arith.constant 0 : index
    %108 = vector.load %arg6[%c3_72, %c0_73, %c0_74] : memref<5x80x3xbf16, #tpu.memory_space<vmem>>, vector<1x80x3xbf16>
    %109 = vector.shape_cast %108 : vector<1x80x3xbf16> to vector<80x3xbf16>
    %cst_75 = arith.constant dense<0.000000e+00> : vector<16x3xf32>
    %110 = tpu.matmul %93, %109, %cst_75 {dimension_numbers = #tpu.dot_dimension_numbers<[1], [0], [0], [1], [0, 0, 1, 1], [], []>} : vector<16x80xbf16>, vector<80x3xbf16>, vector<16x3xf32> -> vector<16x3xf32>
    %111 = vector.extract_strided_slice %110 {offsets = [3, 0], sizes = [12, 3], strides = [1, 1]} : vector<16x3xf32> to vector<12x3xf32>
    %112 = arith.addf %107, %111 : vector<12x3xf32>
    %c4_76 = arith.constant 4 : index
    %c0_77 = arith.constant 0 : index
    %c0_78 = arith.constant 0 : index
    %113 = vector.load %arg6[%c4_76, %c0_77, %c0_78] : memref<5x80x3xbf16, #tpu.memory_space<vmem>>, vector<1x80x3xbf16>
    %114 = vector.shape_cast %113 : vector<1x80x3xbf16> to vector<80x3xbf16>
    %cst_79 = arith.constant dense<0.000000e+00> : vector<16x3xf32>
    %115 = tpu.matmul %93, %114, %cst_79 {dimension_numbers = #tpu.dot_dimension_numbers<[1], [0], [0], [1], [0, 0, 1, 1], [], []>} : vector<16x80xbf16>, vector<80x3xbf16>, vector<16x3xf32> -> vector<16x3xf32>
    %116 = vector.extract_strided_slice %115 {offsets = [4, 0], sizes = [12, 3], strides = [1, 1]} : vector<16x3xf32> to vector<12x3xf32>
    %117 = arith.addf %112, %116 : vector<12x3xf32>
    %c0_80 = arith.constant 0 : index
    %c0_81 = arith.constant 0 : index
    %118 = vector.load %arg13[%c0_80, %c0_81] : memref<16x3xf32, #tpu.memory_space<vmem>>, vector<12x3xf32>
    tpu.vector_store %arg13[%c0_80, %c0_81], %117 {strides = array<i32>} : memref<16x3xf32, #tpu.memory_space<vmem>>, vector<12x3xf32>,
    %c0_82 = arith.constant 0 : index
    %c0_83 = arith.constant 0 : index
    %119 = tpu.strided_load %arg13[%c0_82, %c0_83] {strides = array<i32: 8, 1>} : memref<16x3xf32, #tpu.memory_space<vmem>>, vector<2x3xf32>
    %c0_84 = arith.constant 0 : index
    %c0_85 = arith.constant 0 : index
    %120 = vector.load %arg7[%c0_84, %c0_85] : memref<1x3xf32, #tpu.memory_space<vmem>>, vector<1x3xf32>
    %121 = vector.broadcast %120 : vector<1x3xf32> to vector<2x3xf32>
    %122 = arith.addf %119, %121 : vector<2x3xf32>
    %c0_86 = arith.constant 0 : index
    %c0_87 = arith.constant 0 : index
    %123 = vector.load %arg9[%c0_86, %c0_87] : memref<2x3xf32, #tpu.memory_space<vmem>>, vector<2x3xf32>
    tpu.vector_store %arg9[%c0_86, %c0_87], %122 {strides = array<i32>} : memref<2x3xf32, #tpu.memory_space<vmem>>, vector<2x3xf32>,
    %cst_88 = arith.constant dense<0xFF800000> : vector<2xf32>
    %124 = vector.multi_reduction <maximumf>, %122, %cst_88 [1] : vector<2x3xf32> to vector<2xf32>
    %125 = vector.shape_cast %124 : vector<2xf32> to vector<2x1xf32>
    %126 = tpu.iota {dimensions = array<i32: 1>} : vector<2x3xi32>
    %127 = vector.broadcast %125 : vector<2x1xf32> to vector<2x3xf32>
    %128 = arith.cmpf oeq, %122, %127 : vector<2x3xf32>
    %c3_i32 = arith.constant 3 : i32
    %129 = vector.broadcast %c3_i32 : i32 to vector<2x3xi32>
    %130 = arith.select %128, %126, %129 : vector<2x3xi1>, vector<2x3xi32>
    %cst_89 = arith.constant dense<2147483647> : vector<2xi32>
    %131 = vector.multi_reduction <minsi>, %130, %cst_89 [1] : vector<2x3xi32> to vector<2xi32>
    %132 = vector.shape_cast %131 : vector<2xi32> to vector<2x1xi32>
    %c0_90 = arith.constant 0 : index
    %c0_91 = arith.constant 0 : index
    %133 = vector.load %arg10[%c0_90, %c0_91] : memref<2x1xi32, #tpu.memory_space<vmem>>, vector<2x1xi32>
    tpu.vector_store %arg10[%c0_90, %c0_91], %132 {strides = array<i32>} : memref<2x1xi32, #tpu.memory_space<vmem>>, vector<2x1xi32>,
    return
  }
  func.func @transform_0(%arg0: i32) -> (i32, i32) {
    %c0_i32 = arith.constant 0 : i32
    %c0_i32_0 = arith.constant 0 : i32
    return %arg0, %c0_i32 : i32, i32
  }
  func.func @transform_1(%arg0: i32) -> (i32, i32, i32) {
    %c0_i32 = arith.constant 0 : i32
    %c0_i32_0 = arith.constant 0 : i32
    %c0_i32_1 = arith.constant 0 : i32
    %c0_i32_2 = arith.constant 0 : i32
    return %c0_i32, %c0_i32_0, %c0_i32_1 : i32, i32, i32
  }
  func.func @transform_2(%arg0: i32) -> (i32, i32) {
    %c0_i32 = arith.constant 0 : i32
    %c0_i32_0 = arith.constant 0 : i32
    %c0_i32_1 = arith.constant 0 : i32
    return %c0_i32, %c0_i32_0 : i32, i32
  }
  func.func @transform_3(%arg0: i32) -> (i32, i32, i32) {
    %c0_i32 = arith.constant 0 : i32
    %c0_i32_0 = arith.constant 0 : i32
    %c0_i32_1 = arith.constant 0 : i32
    %c0_i32_2 = arith.constant 0 : i32
    return %c0_i32, %c0_i32_0, %c0_i32_1 : i32, i32, i32
  }
  func.func @transform_4(%arg0: i32) -> (i32, i32) {
    %c0_i32 = arith.constant 0 : i32
    %c0_i32_0 = arith.constant 0 : i32
    %c0_i32_1 = arith.constant 0 : i32
    return %c0_i32, %c0_i32_0 : i32, i32
  }
  func.func @transform_5(%arg0: i32) -> (i32, i32, i32) {
    %c0_i32 = arith.constant 0 : i32
    %c0_i32_0 = arith.constant 0 : i32
    %c0_i32_1 = arith.constant 0 : i32
    %c0_i32_2 = arith.constant 0 : i32
    return %c0_i32, %c0_i32_0, %c0_i32_1 : i32, i32, i32
  }
  func.func @transform_6(%arg0: i32) -> (i32, i32) {
    %c0_i32 = arith.constant 0 : i32
    %c0_i32_0 = arith.constant 0 : i32
    %c0_i32_1 = arith.constant 0 : i32
    return %c0_i32, %c0_i32_0 : i32, i32
  }
  func.func @transform_7(%arg0: i32) -> (i32, i32) {
    %c0_i32 = arith.constant 0 : i32
    %c0_i32_0 = arith.constant 0 : i32
    return %arg0, %c0_i32 : i32, i32
  }
  func.func @transform_8(%arg0: i32) -> (i32, i32) {
    %c0_i32 = arith.constant 0 : i32
    %c0_i32_0 = arith.constant 0 : i32
    return %arg0, %c0_i32 : i32, i32
  }
  func.func @transform_9(%arg0: i32) -> (i32, i32) {
    %c0_i32 = arith.constant 0 : i32
    %c0_i32_0 = arith.constant 0 : i32
    return %arg0, %c0_i32 : i32, i32
  }
}

</mosaic_0001>

<bundles_post_ra>
// kernel: moe_forward.1
= control target key start
LH: loop header
LB: loop body
LE: loop exit
PB: predicated region body
PF: predicated region fallthrough
CT: control target
= control target key end

     0   :  { %s4895_s0 = inlined_call_operand.vmem [shape: bf16[64,96], index: 0, kind: input, shape index: {}]   ;;  %s4896_s1 = inlined_call_operand.vmem [shape: bf16[5,96,168], index: 1, kind: input, shape index: {}]   ;;  %s4897_s2 = inlined_call_operand.vmem [shape: f32[3,168], index: 2, kind: input, shape index: {}]   ;;  %s4898_s3 = inlined_call_operand.vmem [shape: bf16[5,84,160], index: 3, kind: input, shape index: {}]   ;;  %s4899_s4 = inlined_call_operand.vmem [shape: f32[3,160], index: 4, kind: input, shape index: {}]   ;;  %s4900_s5 = inlined_call_operand.vmem [shape: bf16[5,80,3], index: 5, kind: input, shape index: {}]   ;;  %s4901_s6 = inlined_call_operand.vmem [shape: f32[1,3], index: 6, kind: input, shape index: {}]   ;;  %s4902_s7 = inlined_call_operand.vmem [shape: f32[16,80], index: 7, kind: output, shape index: {0}]   ;;  %s4903_s8 = inlined_call_operand.hbm [shape: f32[2,3], index: 8, kind: output, shape index: {1}]   ;;  %s4904_s9 = inlined_call_operand.vmem [shape: s32[2,1], index: 9, kind: output, shape index: {2}]  }
   0x1   :  { %v2483_v0 = vld [vmem:[%s4896_s1 + $0x50] sm:$0xf]  ;;  %v3193_v1 = vld [vmem:[%s4896_s1 + $0x54] sm:$0xf0]  ;;  %v3192_v2 = vld [vmem:[%s4896_s1 + $0x54] sm:$0xf] }
   0x2   :  { %v2484_v3 = vor.u32 %v3193_v1, %v2483_v0  ;;  %v2485_v4 = vld [vmem:[%s4896_s1 + $0x58] sm:$0xf0]  ;;  %v2551_v5 = vld [vmem:[%s4896_s1 + $0xb0] sm:$0xf]  ;;  %v3205_v6 = vld [vmem:[%s4896_s1 + $0xb4] sm:$0xf0] }
   0x3   :  { %v2488_v7 = vor.u32 %v3192_v2, %v2485_v4  ;;  %v2552_v8 = vor.u32 %v3205_v6, %v2551_v5  ;;  %v3204_v9 = vld [vmem:[%s4896_s1 + $0xb4] sm:$0xf]  ;;  %v2553_v10 = vld [vmem:[%s4896_s1 + $0xb8] sm:$0xf0]  ;;  %v2475_v11 = vld [vmem:[%s4896_s1 + $0x40] sm:$0xf] }
   0x4   :  { %146 = vmatpush.bf16.msra.mxu0 %v2484_v3  ;;  %v2556_v12 = vor.u32 %v3204_v9, %v2553_v10  ;;  %v3191_v13 = vld [vmem:[%s4896_s1 + $0x44] sm:$0xf0]  ;;  %v3190_v14 = vld [vmem:[%s4896_s1 + $0x44] sm:$0xf]  ;;  %v2477_v15 = vld [vmem:[%s4896_s1 + $0x48] sm:$0xf0] }
   0x5   :  { %175 = vmatpush.bf16.msra.mxu1 %v2488_v7  ;;  %277 = vmatpush.bf16.msra.mxu2 %v2552_v8  ;;  %v2476_v16 = vor.u32 %v3191_v13, %v2475_v11  ;;  %v2480_v17 = vor.u32 %v3190_v14, %v2477_v15  ;;  %v2543_v18 = vld [vmem:[%s4896_s1 + $0xa0] sm:$0xf]  ;;  %v3203_v19 = vld [vmem:[%s4896_s1 + $0xa4] sm:$0xf0]  ;;  %v3202_v20 = vld [vmem:[%s4896_s1 + $0xa4] sm:$0xf] }
   0x6   :  { %306 = vmatpush.bf16.msra.mxu3 %v2556_v12  ;;  %v2544_v21 = vor.u32 %v3203_v19, %v2543_v18  ;;  %v2545_v22 = vld [vmem:[%s4896_s1 + $0xa8] sm:$0xf0]  ;;  %v2467_v23 = vld [vmem:[%s4896_s1 + $0x30] sm:$0xf]  ;;  %v3189_v24 = vld [vmem:[%s4896_s1 + $0x34] sm:$0xf0] }
   0x7   :  { %v2548_v25 = vor.u32 %v3202_v20, %v2545_v22  ;;  %v3188_v26 = vld [vmem:[%s4896_s1 + $0x34] sm:$0xf]  ;;  %v2469_v27 = vld [vmem:[%s4896_s1 + $0x38] sm:$0xf0]  ;;  %v2535_v28 = vld [vmem:[%s4896_s1 + $0x90] sm:$0xf]  ;;  %v2468_v29 = vor.u32 %v3189_v24, %v2467_v23 }
   0x8   :  { %147 = vmatpush.bf16.msra.mxu0 %v2476_v16  ;;  %v3201_v30 = vld [vmem:[%s4896_s1 + $0x94] sm:$0xf0]  ;;  %v3200_v31 = vld [vmem:[%s4896_s1 + $0x94] sm:$0xf]  ;;  %v2537_v32 = vld [vmem:[%s4896_s1 + $0x98] sm:$0xf0]  ;;  %v2472_v33 = vor.u32 %v3188_v26, %v2469_v27 }
   0x9   :  { %176 = vmatpush.bf16.msra.mxu1 %v2480_v17  ;;  %278 = vmatpush.bf16.msra.mxu2 %v2544_v21  ;;  %v2536_v34 = vor.u32 %v3201_v30, %v2535_v28  ;;  %v2459_v35 = vld [vmem:[%s4896_s1 + $0x20] sm:$0xf]  ;;  %v3187_v36 = vld [vmem:[%s4896_s1 + $0x24] sm:$0xf0]  ;;  %v3186_v37 = vld [vmem:[%s4896_s1 + $0x24] sm:$0xf]  ;;  %v2540_v38 = vor.u32 %v3200_v31, %v2537_v32 }
   0xa   :  { %307 = vmatpush.bf16.msra.mxu3 %v2548_v25  ;;  %v2461_v39 = vld [vmem:[%s4896_s1 + $0x28] sm:$0xf0]  ;;  %v2527_v40 = vld [vmem:[%s4896_s1 + $0x80] sm:$0xf]  ;;  %v3199_v41 = vld [vmem:[%s4896_s1 + $0x84] sm:$0xf0]  ;;  %v2460_v44 = vor.u32 %v3187_v36, %v2459_v35 }
   0xb   :  { %v3198_v42 = vld [vmem:[%s4896_s1 + $0x84] sm:$0xf]  ;;  %v2529_v43 = vld [vmem:[%s4896_s1 + $0x88] sm:$0xf0]  ;;  %v2464_v45 = vor.u32 %v3186_v37, %v2461_v39  ;;  %v2528_v46 = vor.u32 %v3199_v41, %v2527_v40  ;;  %v2451_v47 = vld [vmem:[%s4896_s1 + $0x10] sm:$0xf] }
   0xc   :  { %148 = vmatpush.bf16.msra.mxu0 %v2468_v29  ;;  %v3185_v48 = vld [vmem:[%s4896_s1 + $0x14] sm:$0xf0]  ;;  %v3184_v49 = vld [vmem:[%s4896_s1 + $0x14] sm:$0xf]  ;;  %v2532_v50 = vor.u32 %v3198_v42, %v2529_v43  ;;  %v2453_v51 = vld [vmem:[%s4896_s1 + $0x18] sm:$0xf0] }
   0xd   :  { %177 = vmatpush.bf16.msra.mxu1 %v2472_v33  ;;  %279 = vmatpush.bf16.msra.mxu2 %v2536_v34  ;;  %v2519_v52 = vld [vmem:[%s4896_s1 + $0x70] sm:$0xf]  ;;  %v3197_v53 = vld [vmem:[%s4896_s1 + $0x74] sm:$0xf0]  ;;  %v3196_v54 = vld [vmem:[%s4896_s1 + $0x74] sm:$0xf]  ;;  %v2452_v56 = vor.u32 %v3185_v48, %v2451_v47  ;;  %v2456_v58 = vor.u32 %v3184_v49, %v2453_v51 }
   0xe   :  { %308 = vmatpush.bf16.msra.mxu3 %v2540_v38  ;;  %v2521_v55 = vld [vmem:[%s4896_s1 + $0x78] sm:$0xf0]  ;;  %v2443_v57 = vld [vmem:[%s4896_s1] sm:$0xf]  ;;  %v2520_v59 = vor.u32 %v3197_v53, %v2519_v52  ;;  %v3183_v60 = vld [vmem:[%s4896_s1 + $0x4] sm:$0xf0] }
   0xf   :  { %v3182_v61 = vld [vmem:[%s4896_s1 + $0x4] sm:$0xf]  ;;  %v2445_v62 = vld [vmem:[%s4896_s1 + $0x8] sm:$0xf0]  ;;  %v2524_v63 = vor.u32 %v3196_v54, %v2521_v55  ;;  %v2511_v0 = vld [vmem:[%s4896_s1 + $0x60] sm:$0xf]  ;;  %v2444_v6 = vor.u32 %v3183_v60, %v2443_v57 }
  0x10   :  { %149 = vmatpush.bf16.msra.mxu0 %v2460_v44  ;;  %v3195_v1 = vld [vmem:[%s4896_s1 + $0x64] sm:$0xf0]  ;;  %v3194_v2 = vld [vmem:[%s4896_s1 + $0x64] sm:$0xf]  ;;  %v2513_v3 = vld [vmem:[%s4896_s1 + $0x68] sm:$0xf0]  ;;  %v2448_v9 = vor.u32 %v3182_v61, %v2445_v62 }
  0x11   :  { %178 = vmatpush.bf16.msra.mxu1 %v2464_v45  ;;  %280 = vmatpush.bf16.msra.mxu2 %v2528_v46  ;;  %v2619_v4 = vld [vmem:[%s4896_s1 + $0x110] sm:$0xf]  ;;  %v3217_v5 = vld [vmem:[%s4896_s1 + $0x114] sm:$0xf0]  ;;  %v3216_v7 = vld [vmem:[%s4896_s1 + $0x114] sm:$0xf]  ;;  %v2512_v10 = vor.u32 %v3195_v1, %v2511_v0  ;;  %v2516_v11 = vor.u32 %v3194_v2, %v2513_v3 }
  0x12   :  { %309 = vmatpush.bf16.msra.mxu3 %v2532_v50  ;;  %v2621_v8 = vld [vmem:[%s4896_s1 + $0x118] sm:$0xf0]  ;;  %v2620_v12 = vor.u32 %v3217_v5, %v2619_v4 }
  0x14   :  { %150 = vmatpush.bf16.msra.mxu0 %v2452_v56 }
  0x15   :  { %179 = vmatpush.bf16.msra.mxu1 %v2456_v58  ;;  %281 = vmatpush.bf16.msra.mxu2 %v2520_v59 }
  0x16   :  { %310 = vmatpush.bf16.msra.mxu3 %v2524_v63 }
  0x17   :  { %15 = vsyncpa [#allocation6], 0  ;;  %v3561_v13 = vld [vmem:[%s4895_s0] sm:$0xff]  ;;  %v2624_v14 = vor.u32 %v3216_v7, %v2621_v8  ;;  %v3215_v16 = vld [vmem:[%s4896_s1 + $0x104] sm:$0xf0]  ;;  %vm131_vm0 = vcmask 785408  }
  0x18   :  { %v2611_v15 = vld [vmem:[%s4896_s1 + $0x100] sm:$0xf]  ;;  %151 = vmatpush.bf16.msra.mxu0 %v2444_v6  ;;  %v3214_v17 = vld [vmem:[%s4896_s1 + $0x104] sm:$0xf]  ;;  %v2613_v18 = vld [vmem:[%s4896_s1 + $0x108] sm:$0xf0] }
  0x19   :  { %180 = vmatpush.bf16.msra.mxu1 %v2448_v9  ;;  %282 = vmatpush.bf16.msra.mxu2 %v2512_v10  ;;  %v2612_v19 = vor.u32 %v3215_v16, %v2611_v15  ;;  %v2616_v20 = vor.u32 %v3214_v17, %v2613_v18  ;;  %v2603_v21 = vld [vmem:[%s4896_s1 + $0xf0] sm:$0xf]  ;;  %v3213_v22 = vld [vmem:[%s4896_s1 + $0xf4] sm:$0xf0]  ;;  %v3212_v23 = vld [vmem:[%s4896_s1 + $0xf4] sm:$0xf] }
  0x1a   :  { %311 = vmatpush.bf16.msra.mxu3 %v2516_v11  ;;  %v2605_v24 = vld [vmem:[%s4896_s1 + $0xf8] sm:$0xf0]  ;;  %v2595_v25 = vld [vmem:[%s4896_s1 + $0xe0] sm:$0xf]  ;;  %v2604_v26 = vor.u32 %v3213_v22, %v2603_v21  ;;  %v3211_v27 = vld [vmem:[%s4896_s1 + $0xe4] sm:$0xf0] }
  0x1b   :  { %2489 = vmatmul.msk.bf16.vlgmr.msra.gmra.mxu0 %vm131_vm0, %v3561_v13  ;;  %v2687_v28 = vld [vmem:[%s4896_s1 + $0x170] sm:$0xf]  ;;  %v3229_v29 = vld [vmem:[%s4896_s1 + $0x174] sm:$0xf0]  ;;  %v2608_v30 = vor.u32 %v3212_v23, %v2605_v24  ;;  %v3210_v31 = vld [vmem:[%s4896_s1 + $0xe4] sm:$0xf]  ;;  %v2596_v42 = vor.u32 %v3211_v27, %v2595_v25 }
  0x1c   :  { %487 = vmatpush.bf16.msrb.mxu0 %v2620_v12  ;;  %2493 = vmatmul.msk.bf16.vlgmr.msra.gmra.mxu1 %vm131_vm0, %v3561_v13  ;;  %v2688_v32 = vor.u32 %v3229_v29, %v2687_v28  ;;  %v3228_v33 = vld [vmem:[%s4896_s1 + $0x174] sm:$0xf]  ;;  %v2689_v34 = vld [vmem:[%s4896_s1 + $0x178] sm:$0xf0]  ;;  %v2597_v35 = vld [vmem:[%s4896_s1 + $0xe8] sm:$0xf0] }
  0x1d   :  { %516 = vmatpush.bf16.msrb.mxu1 %v2624_v14  ;;  %2557 = vmatmul.msk.bf16.vlgmr.msra.gmra.mxu2 %vm131_vm0, %v3561_v13  ;;  %v2692_v36 = vor.u32 %v3228_v33, %v2689_v34  ;;  %v2679_v37 = vld [vmem:[%s4896_s1 + $0x160] sm:$0xf]  ;;  %v3227_v38 = vld [vmem:[%s4896_s1 + $0x164] sm:$0xf0]  ;;  %v3226_v40 = vld [vmem:[%s4896_s1 + $0x164] sm:$0xf]  ;;  %v2600_v44 = vor.u32 %v3210_v31, %v2597_v35 }
  0x1e   :  { %2561 = vmatmul.msk.bf16.vlgmr.msra.gmra.mxu3 %vm131_vm0, %v3561_v13  ;;  %697 = vmatpush.bf16.msrb.mxu2 %v2688_v32  ;;  %v2680_v39 = vor.u32 %v3227_v38, %v2679_v37  ;;  %v2681_v41 = vld [vmem:[%s4896_s1 + $0x168] sm:$0xf0]  ;;  %v2587_v45 = vld [vmem:[%s4896_s1 + $0xd0] sm:$0xf]  ;;  %v3209_v46 = vld [vmem:[%s4896_s1 + $0xd4] sm:$0xf0] }
  0x1f   :  { %726 = vmatpush.bf16.msrb.mxu3 %v2692_v36  ;;  %v2684_v43 = vor.u32 %v3226_v40, %v2681_v41  ;;  %v2588_v47 = vor.u32 %v3209_v46, %v2587_v45  ;;  %v3640_v48 = vld [vmem:[%s4895_s0 + $0x8] sm:$0xff]  ;;  %v2671_v49 = vld [vmem:[%s4896_s1 + $0x150] sm:$0xf]  ;;  %v3225_v50 = vld [vmem:[%s4896_s1 + $0x154] sm:$0xf0]  ;;  %vm349_vm1 = vcmask 1046528  }
  0x20   :  { %488 = vmatpush.bf16.msrb.mxu0 %v2612_v19  ;;  %v3224_v51 = vld [vmem:[%s4896_s1 + $0x154] sm:$0xf]  ;;  %v2672_v52 = vor.u32 %v3225_v50, %v2671_v49  ;;  %v2673_v53 = vld [vmem:[%s4896_s1 + $0x158] sm:$0xf0]  ;;  %v2663_v57 = vld [vmem:[%s4896_s1 + $0x140] sm:$0xf] }
  0x21   :  { %517 = vmatpush.bf16.msrb.mxu1 %v2616_v20  ;;  %v2676_v54 = vor.u32 %v3224_v51, %v2673_v53  ;;  %v3208_v55 = vld [vmem:[%s4896_s1 + $0xd4] sm:$0xf]  ;;  %v2589_v56 = vld [vmem:[%s4896_s1 + $0xd8] sm:$0xf0]  ;;  %v3223_v59 = vld [vmem:[%s4896_s1 + $0x144] sm:$0xf0] }
  0x22   :  { %698 = vmatpush.bf16.msrb.mxu2 %v2680_v39  ;;  %v2592_v58 = vor.u32 %v3208_v55, %v2589_v56  ;;  %v3222_v60 = vld [vmem:[%s4896_s1 + $0x144] sm:$0xf]  ;;  %v2665_v61 = vld [vmem:[%s4896_s1 + $0x148] sm:$0xf0]  ;;  %v2664_v62 = vor.u32 %v3223_v59, %v2663_v57  ;;  %v2579_v0 = vld [vmem:[%s4896_s1 + $0xc0] sm:$0xf] }
  0x23   :  { %727 = vmatpush.bf16.msrb.mxu3 %v2684_v43  ;;  %v2668_v63 = vor.u32 %v3222_v60, %v2665_v61  ;;  %v3207_v1 = vld [vmem:[%s4896_s1 + $0xc4] sm:$0xf0]  ;;  %v2655_v2 = vld [vmem:[%s4896_s1 + $0x130] sm:$0xf]  ;;  %v3221_v4 = vld [vmem:[%s4896_s1 + $0x134] sm:$0xf0] }
  0x24   :  { %489 = vmatpush.bf16.msrb.mxu0 %v2604_v26  ;;  %v2580_v3 = vor.u32 %v3207_v1, %v2579_v0  ;;  %v3220_v5 = vld [vmem:[%s4896_s1 + $0x134] sm:$0xf]  ;;  %v2657_v6 = vld [vmem:[%s4896_s1 + $0x138] sm:$0xf0]  ;;  %v3206_v7 = vld [vmem:[%s4896_s1 + $0xc4] sm:$0xf]  ;;  %v2656_v9 = vor.u32 %v3221_v4, %v2655_v2 }
  0x25   :  { %518 = vmatpush.bf16.msrb.mxu1 %v2608_v30  ;;  %v2581_v8 = vld [vmem:[%s4896_s1 + $0xc8] sm:$0xf0]  ;;  %v2660_v11 = vor.u32 %v3220_v5, %v2657_v6  ;;  %v2647_v12 = vld [vmem:[%s4896_s1 + $0x120] sm:$0xf]  ;;  %v3219_v14 = vld [vmem:[%s4896_s1 + $0x124] sm:$0xf0] }
  0x26   :  { %699 = vmatpush.bf16.msrb.mxu2 %v2672_v52  ;;  %v2584_v10 = vor.u32 %v3206_v7, %v2581_v8  ;;  %v3218_v15 = vld [vmem:[%s4896_s1 + $0x124] sm:$0xf]  ;;  %v2649_v16 = vld [vmem:[%s4896_s1 + $0x128] sm:$0xf0]  ;;  %v2648_v17 = vor.u32 %v3219_v14, %v2647_v12  ;;  %v3719_v18 = vld [vmem:[%s4895_s0 + $0x10] sm:$0xff]  ;;  %vm559_vm2 = vcmask 1045504  }
  0x27   :  { %728 = vmatpush.bf16.msrb.mxu3 %v2676_v54  ;;  %v2652_v19 = vor.u32 %v3218_v15, %v2649_v16  ;;  %v2755_v20 = vld [vmem:[%s4896_s1 + $0x1d0] sm:$0xf]  ;;  %v3241_v21 = vld [vmem:[%s4896_s1 + $0x1d4] sm:$0xf0]  ;;  %v3240_v22 = vld [vmem:[%s4896_s1 + $0x1d4] sm:$0xf] }
  0x28   :  { %490 = vmatpush.bf16.msrb.mxu0 %v2596_v42  ;;  %v2756_v23 = vor.u32 %v3241_v21, %v2755_v20  ;;  %v2757_v24 = vld [vmem:[%s4896_s1 + $0x1d8] sm:$0xf0]  ;;  %v2747_v25 = vld [vmem:[%s4896_s1 + $0x1c0] sm:$0xf]  ;;  %v3239_v26 = vld [vmem:[%s4896_s1 + $0x1c4] sm:$0xf0] }
  0x29   :  { %519 = vmatpush.bf16.msrb.mxu1 %v2600_v44  ;;  %v2760_v27 = vor.u32 %v3240_v22, %v2757_v24  ;;  %v2748_v28 = vor.u32 %v3239_v26, %v2747_v25  ;;  %v3750_v29 = vld [vmem:[%s4895_s0 + $0x18] sm:$0xff]  ;;  %v3238_v30 = vld [vmem:[%s4896_s1 + $0x1c4] sm:$0xf]  ;;  %v2749_v31 = vld [vmem:[%s4896_s1 + $0x1c8] sm:$0xf0]  ;;  %vm769_vm3 = vcmask 1044480  }
  0x2a   :  { %700 = vmatpush.bf16.msrb.mxu2 %v2664_v62  ;;  %v2739_v32 = vld [vmem:[%s4896_s1 + $0x1b0] sm:$0xf]  ;;  %v2752_v33 = vor.u32 %v3238_v30, %v2749_v31  ;;  %v3237_v34 = vld [vmem:[%s4896_s1 + $0x1b4] sm:$0xf0]  ;;  %v3236_v35 = vld [vmem:[%s4896_s1 + $0x1b4] sm:$0xf] }
  0x2b   :  { %2490 = vmatmul.msk.bf16.gmra.mxu0 %vm131_vm0, %v3640_v48  ;;  %729 = vmatpush.bf16.msrb.mxu3 %v2668_v63  ;;  %v2741_v36 = vld [vmem:[%s4896_s1 + $0x1b8] sm:$0xf0]  ;;  %v2740_v37 = vor.u32 %v3237_v34, %v2739_v32  ;;  %v2731_v39 = vld [vmem:[%s4896_s1 + $0x1a0] sm:$0xf]  ;;  %v3235_v40 = vld [vmem:[%s4896_s1 + $0x1a4] sm:$0xf0] }
  0x2c   :  { %491 = vmatpush.bf16.msrb.mxu0 %v2588_v47  ;;  %2494 = vmatmul.msk.bf16.gmra.mxu1 %vm131_vm0, %v3640_v48  ;;  %v2744_v38 = vor.u32 %v3236_v35, %v2741_v36  ;;  %v3234_v41 = vld [vmem:[%s4896_s1 + $0x1a4] sm:$0xf]  ;;  %v2732_v42 = vor.u32 %v3235_v40, %v2731_v39  ;;  %v2733_v43 = vld [vmem:[%s4896_s1 + $0x1a8] sm:$0xf0]  ;;  %v2723_v44 = vld [vmem:[%s4896_s1 + $0x190] sm:$0xf] }
  0x2d   :  { %2558 = vmatmul.msk.bf16.gmra.mxu2 %vm131_vm0, %v3640_v48  ;;  %520 = vmatpush.bf16.msrb.mxu1 %v2592_v58  ;;  %v3233_v45 = vld [vmem:[%s4896_s1 + $0x194] sm:$0xf0]  ;;  %v2736_v46 = vor.u32 %v3234_v41, %v2733_v43  ;;  %v3232_v49 = vld [vmem:[%s4896_s1 + $0x194] sm:$0xf]  ;;  %v2725_v50 = vld [vmem:[%s4896_s1 + $0x198] sm:$0xf0] }
  0x2e   :  { %2562 = vmatmul.msk.bf16.gmra.mxu3 %vm131_vm0, %v3640_v48  ;;  %701 = vmatpush.bf16.msrb.mxu2 %v2656_v9  ;;  %v2724_v47 = vor.u32 %v3233_v45, %v2723_v44  ;;  %v2715_v51 = vld [vmem:[%s4896_s1 + $0x180] sm:$0xf]  ;;  %v2728_v52 = vor.u32 %v3232_v49, %v2725_v50  ;;  %v3231_v53 = vld [vmem:[%s4896_s1 + $0x184] sm:$0xf0]  ;;  %v3230_v55 = vld [vmem:[%s4896_s1 + $0x184] sm:$0xf] }
  0x2f   :  { %730 = vmatpush.bf16.msrb.mxu3 %v2660_v11  ;;  %v2716_v54 = vor.u32 %v3231_v53, %v2715_v51  ;;  %v2717_v56 = vld [vmem:[%s4896_s1 + $0x188] sm:$0xf0]  ;;  %vm979_vm4 = vcmask 1043456   ;;  %vm1303_vm5 = vcmask 1041408   ;;  %vm1174_vm6 = vcmask 359424   ;;  %s3351_s1 = smov [#allocation5]  }
  0x30   :  { %492 = vmatpush.bf16.msrb.mxu0 %v2580_v3  ;;  %v2720_v57 = vor.u32 %v3230_v55, %v2717_v56  ;;  %vm1199_vm7 = vcmask 687104   ;;  %vm1207_vm8 = vcmask 683008   ;;  %vm2037_vm9 = vcmask 650240   ;;  %s2408_s24 = sshll.u32 %s3351_s1, 4  ;;  %s2409_s24 = int_to_ptr.vmem [resolvable:$true] %s2408_s24 }
  0x31   :  { %521 = vmatpush.bf16.msrb.mxu1 %v2584_v10  ;;  %vm2020_vm10 = vcmask 392192   ;;  %vm2033_vm11 = vcmask 654336   ;;  %vm2367_vm12 = vcmask 19456   ;;  %vm2365_vm13 = vcmask 23552  }
  0x32   :  { %702 = vmatpush.bf16.msrb.mxu2 %v2648_v17  ;;  %vm2375_vm14 = vcmask 17408  }
  0x33   :  { %731 = vmatpush.bf16.msrb.mxu3 %v2652_v19 }
  0x34   :  { %907 = vmatpush.bf16.msra.mxu0 %v2756_v23 }
  0x35   :  { %936 = vmatpush.bf16.msra.mxu1 %v2760_v27 }
  0x38   :  { %908 = vmatpush.bf16.msra.mxu0 %v2748_v28 }
  0x39   :  { %937 = vmatpush.bf16.msra.mxu1 %v2752_v33 }
  0x3b   :  { %2491 = vmatmul.msk.bf16.gmra.mxu0 %vm131_vm0, %v3719_v18 }
  0x3c   :  { %2495 = vmatmul.msk.bf16.gmra.mxu1 %vm131_vm0, %v3719_v18  ;;  %909 = vmatpush.bf16.msra.mxu0 %v2740_v37 }
  0x3d   :  { %2559 = vmatmul.msk.bf16.gmra.mxu2 %vm131_vm0, %v3719_v18  ;;  %938 = vmatpush.bf16.msra.mxu1 %v2744_v38 }
  0x3e   :  { %2563 = vmatmul.msk.bf16.gmra.mxu3 %vm131_vm0, %v3719_v18 }
  0x40   :  { %910 = vmatpush.bf16.msra.mxu0 %v2732_v42 }
  0x41   :  { %939 = vmatpush.bf16.msra.mxu1 %v2736_v46 }
  0x44   :  { %911 = vmatpush.bf16.msra.mxu0 %v2724_v47 }
  0x45   :  { %940 = vmatpush.bf16.msra.mxu1 %v2728_v52 }
  0x48   :  { %912 = vmatpush.bf16.msra.mxu0 %v2716_v54 }
  0x49   :  { %941 = vmatpush.bf16.msra.mxu1 %v2720_v57 }
  0x4b   :  { %2492 = vmatmul.msk.bf16.gmra.mxu0 %vm131_vm0, %v3750_v29 }
  0x4c   :  { %2496 = vmatmul.msk.bf16.gmra.mxu1 %vm131_vm0, %v3750_v29 }
  0x4d   :  { %2560 = vmatmul.msk.bf16.gmra.mxu2 %vm131_vm0, %v3750_v29 }
  0x4e   :  { %2564 = vmatmul.msk.bf16.gmra.mxu3 %vm131_vm0, %v3750_v29 }
  0x5b   :  { %2625 = vmatmul.msk.bf16.vlgmr.msrb.gmra.mxu0 %vm131_vm0, %v3561_v13 }
  0x5c   :  { %2629 = vmatmul.msk.bf16.vlgmr.msrb.gmra.mxu1 %vm131_vm0, %v3561_v13 }
  0x5d   :  { %2693 = vmatmul.msk.bf16.vlgmr.msrb.gmra.mxu2 %vm131_vm0, %v3561_v13 }
  0x5e   :  { %2697 = vmatmul.msk.bf16.vlgmr.msrb.gmra.mxu3 %vm131_vm0, %v3561_v13 }
  0x6b   :  { %2626 = vmatmul.msk.bf16.gmra.mxu0 %vm131_vm0, %v3640_v48 }
  0x6c   :  { %2630 = vmatmul.msk.bf16.gmra.mxu1 %vm131_vm0, %v3640_v48 }
  0x6d   :  { %2694 = vmatmul.msk.bf16.gmra.mxu2 %vm131_vm0, %v3640_v48 }
  0x6e   :  { %2698 = vmatmul.msk.bf16.gmra.mxu3 %vm131_vm0, %v3640_v48 }
  0x7b   :  { %2627 = vmatmul.msk.bf16.gmra.mxu0 %vm131_vm0, %v3719_v18 }
  0x7c   :  { %2631 = vmatmul.msk.bf16.gmra.mxu1 %vm131_vm0, %v3719_v18 }
  0x7d   :  { %2695 = vmatmul.msk.bf16.gmra.mxu2 %vm131_vm0, %v3719_v18 }
  0x7e   :  { %2699 = vmatmul.msk.bf16.gmra.mxu3 %vm131_vm0, %v3719_v18 }
  0x8b   :  { %2628 = vmatmul.msk.bf16.gmra.mxu0 %vm131_vm0, %v3750_v29 }
  0x8c   :  { %2632 = vmatmul.msk.bf16.gmra.mxu1 %vm131_vm0, %v3750_v29 }
  0x8d   :  { %2696 = vmatmul.msk.bf16.gmra.mxu2 %vm131_vm0, %v3750_v29 }
  0x8e   :  { %2700 = vmatmul.msk.bf16.gmra.mxu3 %vm131_vm0, %v3750_v29 }
  0x98   :  { %v153_v58 = vpop.f32.mrf.mxu0 }
  0x99   :  { %v182_v59 = vpop.f32.mrf.mxu1 }
  0x9b   :  { %2761 = vmatmul.msk.bf16.vlgmr.msra.gmra.mxu0 %vm131_vm0, %v3561_v13 }
  0x9c   :  { %2765 = vmatmul.msk.bf16.vlgmr.msra.gmra.mxu1 %vm131_vm0, %v3561_v13 }
  0xa0   :  { %v284_v60 = vpop.f32.mrf.mxu2  ;;  %v3850_v62 = vpop.f32.mrf.mxu0 }
  0xa1   :  { %v313_v61 = vpop.f32.mrf.mxu3  ;;  %v184_v63 = vpop.f32.mrf.mxu1  ;;  %v350_v0 = vrot.slane %v284_v60, 1 }
  0xa2   :  { %v353_v1 = vrot.slane %v313_v61, 1 }
  0xa8   :  { %v3852_v2 = vpop.f32.mrf.mxu2  ;;  %v3855_v5 = vpop.f32.mrf.mxu0 }
  0xa9   :  { %v351_v3 = vrot.slane %v3852_v2, 1  ;;  %v315_v4 = vpop.f32.mrf.mxu3  ;;  %v187_v7 = vpop.f32.mrf.mxu1 }
  0xaa   :  { %v354_v6 = vrot.slane %v315_v4, 1 }
  0xab   :  { %v352_v13 = vsel %vm349_vm1, %v350_v0, %v351_v3  ;;  %2762 = vmatmul.msk.bf16.gmra.mxu0 %vm131_vm0, %v3640_v48 }
  0xac   :  { %v396_v8 = vadd.f32 %v352_v13, %v153_v58  ;;  %v355_v9 = vsel %vm349_vm1, %v353_v1, %v354_v6  ;;  %2766 = vmatmul.msk.bf16.gmra.mxu1 %vm131_vm0, %v3640_v48 }
  0xad   :  { %v397_v10 = vadd.f32 %v355_v9, %v182_v59 }
  0xb0   :  { %v3865_v12 = vpop.f32.mrf.mxu0  ;;  %v3887_v24 = vpop.f32.mrf.mxu2 }
  0xb1   :  { %v318_v11 = vpop.f32.mrf.mxu3  ;;  %v3867_v14 = vpop.f32.mrf.mxu1 }
  0xb2   :  { %v358_v17 = vrot.slane %v318_v11, 1 }
  0xb4   :  { %v359_v45 = vsel %vm349_vm1, %v354_v6, %v358_v17 }
  0xb5   :  { %v399_v50 = vadd.f32 %v359_v45, %v184_v63 }
  0xb8   :  { %v3871_v16 = vpop.f32.mrf.mxu0  ;;  %v3897_v27 = vpop.f32.mrf.mxu2 }
  0xb9   :  { %v3869_v15 = vpop.f32.mrf.mxu3  ;;  %v3874_v20 = vpop.f32.mrf.mxu1 }
  0xba   :  { %v4906_v19 = vrot.slane %v3869_v15, 1 }
  0xbb   :  { %2763 = vmatmul.msk.bf16.gmra.mxu0 %vm131_vm0, %v3719_v18 }
  0xbc   :  { %v363_v21 = vsel %vm349_vm1, %v358_v17, %v4906_v19  ;;  %2767 = vmatmul.msk.bf16.gmra.mxu1 %vm131_vm0, %v3719_v18 }
  0xbd   :  { %v401_v48 = vadd.f32 %v363_v21, %v187_v7 }
  0xc0   :  { %v3883_v22 = vpop.f32.mrf.mxu0  ;;  %v3903_v31 = vpop.f32.mrf.mxu2 }
  0xc1   :  { %v3885_v23 = vpop.f32.mrf.mxu1  ;;  %v3905_v33 = vpop.f32.mrf.mxu3 }
  0xc8   :  { %v3889_v25 = vpop.f32.mrf.mxu0  ;;  %v3910_v39 = vpop.f32.mrf.mxu2 }
  0xc9   :  { %v3891_v26 = vpop.f32.mrf.mxu1  ;;  %v3916_v43 = vpop.f32.mrf.mxu3 }
  0xca   :  { %4908 = vst [vmem:[#allocation8_spill] sm:$0xff] %v3891_v26 }
  0xcb   :  { %2764 = vmatmul.msk.bf16.gmra.mxu0 %vm131_vm0, %v3750_v29 }
  0xcc   :  { %2768 = vmatmul.msk.bf16.gmra.mxu1 %vm131_vm0, %v3750_v29 }
  0xd0   :  { %v3899_v28 = vpop.f32.mrf.mxu0  ;;  %v3922_v52 = vpop.f32.mrf.mxu2 }
  0xd1   :  { %v3901_v18 = vpop.f32.mrf.mxu1  ;;  %v3926_v54 = vpop.f32.mrf.mxu3 }
  0xd2   :  { %4909 = vst [vmem:[#allocation9_spill] sm:$0xff] %v3901_v18 }
  0xd8   :  { %v494_v30 = vpop.f32.mrf.mxu0  ;;  %v3938_v60 = vpop.f32.mrf.mxu2 }
  0xd9   :  { %v523_v32 = vpop.f32.mrf.mxu1  ;;  %v560_v36 = vrot.slane %v494_v30, 2  ;;  %v3942_v63 = vpop.f32.mrf.mxu3 }
  0xda   :  { %v563_v34 = vrot.slane %v523_v32, 2 }
  0xe0   :  { %v3907_v35 = vpop.f32.mrf.mxu0  ;;  %v704_v4 = vpop.f32.mrf.mxu2 }
  0xe1   :  { %v4907_v37 = vrot.slane %v3907_v35, 2  ;;  %v525_v29 = vpop.f32.mrf.mxu1  ;;  %v733_v7 = vpop.f32.mrf.mxu3  ;;  %v4910_v26 = vrot.slane %v3907_v35, 2 }
  0xe2   :  { %v564_v38 = vrot.slane %v525_v29, 2  ;;  %v356_v29 = vrot.slane %v3887_v24, 1 }
  0xe3   :  { %v562_v40 = vsel %vm559_vm2, %v560_v36, %v4907_v37 }
  0xe4   :  { %v606_v41 = vadd.f32 %v562_v40, %v396_v8  ;;  %v565_v42 = vsel %vm559_vm2, %v563_v34, %v564_v38  ;;  %v770_v34 = vrot.slane %v704_v4, 3  ;;  %v773_v40 = vrot.slane %v733_v7, 3 }
  0xe5   :  { %v607_v44 = vadd.f32 %v565_v42, %v397_v10 }
  0xe8   :  { %v3919_v46 = vpop.f32.mrf.mxu0  ;;  %v706_v9 = vpop.f32.mrf.mxu2 }
  0xe9   :  { %v528_v47 = vpop.f32.mrf.mxu1  ;;  %v735_v10 = vpop.f32.mrf.mxu3  ;;  %v771_v36 = vrot.slane %v706_v9, 3  ;;  %v566_v24 = vrot.slane %v3919_v46, 2 }
  0xea   :  { %v568_v49 = vrot.slane %v528_v47, 2  ;;  %v774_v42 = vrot.slane %v735_v10, 3  ;;  %v364_v10 = vrot.slane %v3903_v31, 1 }
  0xeb   :  { %v772_v45 = vsel %vm769_vm3, %v770_v34, %v771_v36  ;;  %v567_v18 = vsel %vm559_vm2, %v4910_v26, %v566_v24  ;;  %v366_v26 = vrot.slane %v3905_v33, 1 }
  0xec   :  { %v569_v51 = vsel %vm559_vm2, %v564_v38, %v568_v49  ;;  %v3966_v38 = vld [vmem:[%s4897_s2] sm:$0x77]  ;;  %v816_v34 = vadd.f32 %v772_v45, %v606_v41  ;;  %s3348_s2 = smov 44  }
  0xed   :  { %v3924_v53 = vadd.f32 %v569_v51, %v399_v50  ;;  %v1044_v47 = vperm.slane %v3966_v38, 0  ;;  %v360_v50 = vrot.slane %v3897_v27, 1  ;;  %v1045_v7 = vperm.slane %v3966_v38, 4 }
  0xef   :  { %v3983_v37 = vperm.slane %v1044_v47, 0  ;;  %v361_v47 = vsel %vm349_vm1, %v356_v29, %v360_v50 }
  0xf0   :  { %v3928_v55 = vpop.f32.mrf.mxu0  ;;  %v3958_v21 = vpop.f32.mrf.mxu2 }
  0xf1   :  { %v3930_v56 = vpop.f32.mrf.mxu1  ;;  %v776_v27 = vrot.slane %v3958_v21, 3 }
  0xf2   :  { %v4905_v57 = vrot.slane %v3930_v56, 2 }
  0xf4   :  { %v573_v58 = vsel %vm559_vm2, %v568_v49, %v4905_v57  ;;  %v357_v49 = vsel %vm349_vm1, %v351_v3, %v356_v29  ;;  %v368_v29 = vrot.slane %v3910_v39, 1 }
  0xf5   :  { %v3936_v59 = vadd.f32 %v573_v58, %v401_v48  ;;  %v3960_v48 = vpop.f32.mrf.mxu3  ;;  %v775_v58 = vsel %vm769_vm3, %v773_v40, %v774_v42  ;;  %v1082_v40 = vperm.slane %v3966_v38, 1  ;;  %v398_v21 = vadd.f32 %v357_v49, %v3850_v62 }
  0xf6   :  { %v778_v31 = vrot.slane %v3960_v48, 3  ;;  %v777_v48 = vsel %vm769_vm3, %v771_v36, %v776_v27  ;;  %v1083_v62 = vperm.slane %v3966_v38, 5 }
  0xf8   :  { %v3940_v61 = vpop.f32.mrf.mxu0  ;;  %v3975_v51 = vpop.f32.mrf.mxu2 }
  0xf9   :  { %v3944_v0 = vpop.f32.mrf.mxu1 }
  0xfd   :  { %v3980_v57 = vpop.f32.mrf.mxu3 }
 0x100   :  { %v3946_v1 = vpop.f32.mrf.mxu0 }
 0x101   :  { %v3948_v6 = vpop.f32.mrf.mxu1 }
 0x108   :  { %v3950_v13 = vpop.f32.mrf.mxu0 }
 0x109   :  { %v3952_v8 = vpop.f32.mrf.mxu1 }
 0x110   :  { %v3954_v11 = vpop.f32.mrf.mxu0 }
 0x111   :  { %v3956_v17 = vpop.f32.mrf.mxu1 }
 0x118   :  { %v914_v30 = vpop.f32.mrf.mxu0 }
 0x119   :  { %v943_v32 = vpop.f32.mrf.mxu1  ;;  %v980_v2 = vrot.slane %v914_v30, 4 }
 0x11a   :  { %v983_v4 = vrot.slane %v943_v32, 4  ;;  %v817_v32 = vadd.f32 %v775_v58, %v607_v44  ;;  %v570_v44 = vrot.slane %v3928_v55, 2 }
 0x120   :  { %v916_v9 = vpop.f32.mrf.mxu0 }
 0x121   :  { %v981_v3 = vrot.slane %v916_v9, 4  ;;  %v945_v19 = vpop.f32.mrf.mxu1  ;;  %v3992_v9 = vperm.slane %v1045_v7, 0  ;;  %v608_v7 = vadd.f32 %v567_v18, %v398_v21 }
 0x122   :  { %v984_v46 = vrot.slane %v945_v19, 4  ;;  %v1104_v19 = vperm.slane %v3966_v38, 2 }
 0x123   :  { %v982_v41 = vsel %vm979_vm4, %v980_v2, %v981_v3  ;;  %v779_v2 = vsel %vm769_vm3, %v774_v42, %v778_v31 }
 0x124   :  { %v1026_v45 = vadd.f32 %v982_v41, %v816_v34  ;;  %v985_v30 = vsel %vm979_vm4, %v983_v4, %v984_v46  ;;  %v4001_v34 = vperm.slane %v1082_v40, 1  ;;  %v365_v4 = vsel %vm349_vm1, %v360_v50, %v364_v10 }
 0x125   :  { %v1027_v35 = vadd.f32 %v985_v30, %v817_v32  ;;  %v4008_v33 = vperm.slane %v1104_v19, 2  ;;  %v818_v41 = vadd.f32 %v777_v48, %v608_v7  ;;  %v571_v40 = vsel %vm559_vm2, %v566_v24, %v570_v44  ;;  %v4018_v19 = vpop.f32.mrf.mxu3 }
 0x126   :  { %v1050_v58 = vadd.f32 %v3983_v37, %v1026_v45  ;;  %v4012_v45 = vpop.f32.mrf.mxu2  ;;  %v819_v42 = vadd.f32 %v779_v2, %v3924_v53  ;;  %v780_v30 = vrot.slane %v3975_v51, 3  ;;  %v4021_v48 = vperm.slane %v1083_v62, 1 }
 0x127   :  { %v1051_v55 = vadd.f32 %v3992_v9, %v1027_v35  ;;  %v1105_v24 = vperm.slane %v3966_v38, 6  ;;  %v400_v2 = vadd.f32 %v361_v47, %v3855_v5  ;;  %v369_v38 = vsel %vm349_vm1, %v364_v10, %v368_v29 }
 0x128   :  { %v919_v49 = vpop.f32.mrf.mxu0  ;;  %v1066_v32 = vmax.f32 %v1050_v58, 0.0  ;;  %v781_v62 = vsel %vm769_vm3, %v776_v27, %v780_v30  ;;  %v372_v47 = vrot.slane %v3922_v52, 1  ;;  %v4913_v10 = vrot.slane %v3980_v57, 3 }
 0x129   :  { %v986_v18 = vrot.slane %v919_v49, 4  ;;  %v948_v50 = vpop.f32.mrf.mxu1  ;;  %v1067_v51 = vmax.f32 %v1051_v55, 0.0 }
 0x12a   :  { %v988_v21 = vrot.slane %v948_v50, 4  ;;  %v1088_v35 = vmul.f32 %v4001_v34, %v1066_v32  ;;  %v402_v32 = vadd.f32 %v365_v4, %v3865_v12  ;;  %v4911_v50 = vrot.slane %v3869_v15, 1 }
 0x12b   :  { %v987_v36 = vsel %vm979_vm4, %v981_v3, %v986_v18  ;;  %v4912_v12 = vrot.slane %v3916_v43, 1  ;;  %v610_v4 = vadd.f32 %v571_v40, %v400_v2  ;;  %v783_v27 = vsel %vm769_vm3, %v778_v31, %v4913_v10 }
 0x12c   :  { %v1028_v7 = vadd.f32 %v987_v36, %v818_v41  ;;  %v989_v49 = vsel %vm979_vm4, %v984_v46, %v988_v21  ;;  %v4026_v53 = vadd.f32 %v4008_v33, %v1088_v35  ;;  %v367_v58 = vsel %vm349_vm1, %v4911_v50, %v366_v26 }
 0x12d   :  { %v1029_v3 = vadd.f32 %v989_v49, %v819_v42  ;;  %v574_v46 = vrot.slane %v3940_v61, 2  ;;  %v371_v15 = vsel %vm349_vm1, %v366_v26, %v4912_v12  ;;  %v1089_v36 = vmul.f32 %v4021_v48, %v1067_v51 }
 0x12e   :  { %1142 = vrot.lane.b32.xlu0 %v4026_v53, %s3348_s2  ;;  %v1052_v5 = vadd.f32 %v3983_v37, %v1028_v7  ;;  %v4050_v41 = vperm.slane %v1105_v24, 2  ;;  %v374_v35 = vrot.slane %v3926_v54, 1  ;;  %v820_v7 = vadd.f32 %v781_v62, %v610_v4  ;;  %v4059_v51 = vpop.f32.mrf.mxu2  ;;  %v1241_v54 = vld [vmem:[%s4898_s3 + $0x50] sm:$0x33] }
 0x12f   :  { %v1053_v55 = vadd.f32 %v3992_v9, %v1029_v3  ;;  %v576_v26 = vrot.slane %v3944_v0, 2  ;;  %v575_v40 = vsel %vm559_vm2, %v570_v44, %v574_v46  ;;  %v784_v2 = vrot.slane %v4012_v45, 3 }
 0x130   :  { %v921_v61 = vpop.f32.mrf.mxu0  ;;  %v1068_v42 = vmax.f32 %v1052_v5, 0.0  ;;  %v821_v12 = vadd.f32 %v783_v27, %v3936_v59  ;;  %v786_v24 = vrot.slane %v4018_v19, 3  ;;  %v1111_v10 = vadd.f32 %v4050_v41, %v1089_v36  ;;  %v4070_v19 = vpop.f32.mrf.mxu3 }
 0x131   :  { %v990_v49 = vrot.slane %v921_v61, 4  ;;  %v950_v50 = vpop.f32.mrf.mxu1  ;;  %v1069_v62 = vmax.f32 %v1053_v55, 0.0  ;;  %v403_v45 = vadd.f32 %v367_v58, %v3867_v14  ;;  %v404_v61 = vadd.f32 %v369_v38, %v3871_v16 }
 0x132   :  { %v992_v3 = vrot.slane %v950_v50, 4  ;;  %v1090_v31 = vmul.f32 %v4001_v34, %v1068_v42  ;;  %v405_v59 = vadd.f32 %v371_v15, %v3874_v20  ;;  %v578_v36 = vrot.slane %v3946_v1, 2 }
 0x133   :  { %v991_v5 = vsel %vm979_vm4, %v986_v18, %v990_v49  ;;  %v4914_v18 = vrot.slane %v3930_v56, 2  ;;  %v373_v16 = vsel %vm349_vm1, %v368_v29, %v372_v47  ;;  %v4915_v20 = vrot.slane %v3916_v43, 1 }
 0x134   :  { %v1030_v4 = vadd.f32 %v991_v5, %v820_v7  ;;  %v993_v0 = vsel %vm979_vm4, %v988_v21, %v992_v3  ;;  %v4065_v44 = vadd.f32 %v4008_v33, %v1090_v31  ;;  %v785_v21 = vsel %vm769_vm3, %v780_v30, %v784_v2 }
 0x135   :  { %v1031_v27 = vadd.f32 %v993_v0, %v821_v12  ;;  %v577_v55 = vsel %vm559_vm2, %v4914_v18, %v576_v26  ;;  %v375_v56 = vsel %vm349_vm1, %v4915_v20, %v374_v35  ;;  %v612_v1 = vadd.f32 %v575_v40, %v402_v32 }
 0x136   :  { %1144 = vrot.lane.b32.xlu0 %v1111_v10, %s3348_s2  ;;  %1146 = vrot.lane.b32.xlu1 %v4065_v44, %s3348_s2  ;;  %v1054_v14 = vadd.f32 %v3983_v37, %v1030_v4  ;;  %v1091_v30 = vmul.f32 %v4021_v48, %v1069_v62  ;;  %v376_v58 = vrot.slane %v3938_v60, 1  ;;  %v4916_v38 = vrot.slane %v3980_v57, 3  ;;  %v4918_v60 = vld [vmem:[#allocation8_spill] sm:$0xff] }
 0x137   :  { %v1055_v42 = vadd.f32 %v3992_v9, %v1031_v27  ;;  %v613_v29 = vadd.f32 %v577_v55, %v403_v45  ;;  %v822_v50 = vadd.f32 %v785_v21, %v612_v1  ;;  %v580_v31 = vrot.slane %v3948_v6, 2  ;;  %v4111_v21 = vpop.f32.mrf.mxu2 }
 0x138   :  { %v787_v15 = vsel %vm769_vm3, %v4916_v38, %v786_v24  ;;  %v924_v39 = vpop.f32.mrf.mxu0  ;;  %v1070_v7 = vmax.f32 %v1054_v14, 0.0  ;;  %v579_v32 = vsel %vm559_vm2, %v574_v46, %v578_v36  ;;  %v788_v40 = vrot.slane %v4059_v51, 3 }
 0x139   :  { %v994_v43 = vrot.slane %v924_v39, 4  ;;  %v953_v12 = vpop.f32.mrf.mxu1  ;;  %v823_v57 = vadd.f32 %v787_v15, %v613_v29  ;;  %v790_v4 = vrot.slane %v4070_v19, 3  ;;  %v1113_v10 = vadd.f32 %v4050_v41, %v1091_v30 }
 0x13a   :  { %v996_v5 = vrot.slane %v953_v12, 4  ;;  %v1092_v62 = vmul.f32 %v4001_v34, %v1070_v7  ;;  %v1071_v18 = vmax.f32 %v1055_v42, 0.0  ;;  %v406_v46 = vadd.f32 %v373_v16, %v3883_v22  ;;  %v4122_v16 = vpop.f32.mrf.mxu3 }
 0x13b   :  { %v995_v0 = vsel %vm979_vm4, %v990_v49, %v994_v43  ;;  %v407_v51 = vadd.f32 %v375_v56, %v3885_v23  ;;  %v581_v55 = vsel %vm559_vm2, %v576_v26, %v580_v31  ;;  %v378_v49 = vrot.slane %v3942_v63, 1 }
 0x13c   :  { %v1032_v45 = vadd.f32 %v995_v0, %v822_v50  ;;  %v997_v27 = vsel %vm979_vm4, %v992_v3, %v996_v5  ;;  %v4106_v6 = vadd.f32 %v4008_v33, %v1092_v62  ;;  %v789_v14 = vsel %vm769_vm3, %v784_v2, %v788_v40 }
 0x13d   :  { %v1033_v19 = vadd.f32 %v997_v27, %v823_v57  ;;  %v582_v20 = vrot.slane %v3950_v13, 2  ;;  %v614_v22 = vadd.f32 %v579_v32, %v404_v61  ;;  %v791_v23 = vsel %vm769_vm3, %v786_v24, %v790_v4 }
 0x13e   :  { %v1056_v3 = vadd.f32 %v3983_v37, %v1032_v45  ;;  %1148 = vrot.lane.b32.xlu1 %v1113_v10, %s3348_s2  ;;  %1150 = vrot.lane.b32.xlu2 %v4106_v6, %s3348_s2  ;;  %v584_v26 = vrot.slane %v3952_v8, 2  ;;  %v4130_v2 = vsel %vm349_vm1, %v372_v47, %v376_v58  ;;  %v615_v1 = vadd.f32 %v581_v55, %v405_v59 }
 0x13f   :  { %v1057_v56 = vadd.f32 %v3992_v9, %v1033_v19  ;;  %v1093_v38 = vmul.f32 %v4021_v48, %v1071_v18  ;;  %v824_v15 = vadd.f32 %v789_v14, %v614_v22  ;;  %v792_v24 = vrot.slane %v4111_v21, 3 }
 0x140   :  { %v926_v30 = vpop.f32.mrf.mxu0  ;;  %v1072_v61 = vmax.f32 %v1056_v3, 0.0  ;;  %v825_v29 = vadd.f32 %v791_v23, %v615_v1  ;;  %v583_v50 = vsel %vm559_vm2, %v578_v36, %v582_v20  ;;  %v585_v59 = vsel %vm559_vm2, %v580_v31, %v584_v26 }
 0x141   :  { %v998_v42 = vrot.slane %v926_v30, 4  ;;  %v955_v39 = vpop.f32.mrf.mxu1  ;;  %v1073_v7 = vmax.f32 %v1057_v56, 0.0  ;;  %v794_v12 = vrot.slane %v4122_v16, 3  ;;  %v1115_v10 = vadd.f32 %v4050_v41, %v1093_v38 }
 0x142   :  { %v1000_v52 = vrot.slane %v955_v39, 4  ;;  %v1094_v47 = vmul.f32 %v4001_v34, %v1072_v61  ;;  %v379_v31 = vsel %vm349_vm1, %v374_v35, %v378_v49  ;;  %v616_v18 = vadd.f32 %v583_v50, %v406_v46  ;;  %v750_v56 = vpop.f32.mrf.mxu3 }
 0x143   :  { %v999_v32 = vsel %vm979_vm4, %v994_v43, %v998_v42  ;;  %v1095_v62 = vmul.f32 %v4021_v48, %v1073_v7  ;;  %v793_v43 = vsel %vm769_vm3, %v788_v40, %v792_v24  ;;  %v586_v55 = vrot.slane %v3954_v11, 2  ;;  %v721_v40 = vpop.f32.mrf.mxu2 }
 0x144   :  { %v1034_v57 = vadd.f32 %v999_v32, %v824_v15  ;;  %v1001_v0 = vsel %vm979_vm4, %v996_v5, %v1000_v52  ;;  %v4147_v36 = vadd.f32 %v4008_v33, %v1094_v47  ;;  %v617_v5 = vadd.f32 %v585_v59, %v407_v51 }
 0x145   :  { %v1035_v45 = vadd.f32 %v1001_v0, %v825_v29  ;;  %v1117_v27 = vadd.f32 %v4050_v41, %v1095_v62  ;;  %v795_v35 = vsel %vm769_vm3, %v790_v4, %v794_v12  ;;  %v1273_v11 = vunpack.c.l.b16 %v1241_v54 }
 0x146   :  { %v1058_v19 = vadd.f32 %v3983_v37, %v1034_v57  ;;  %1152 = vrot.lane.b32.xlu2 %v1115_v10, %s3348_s2  ;;  %1154 = vrot.lane.b32.xlu0 %v4147_v36, %s3348_s2  ;;  %v1274_v51 = vunpack.c.h.b16 %v1241_v54  ;;  %v826_v14 = vadd.f32 %v793_v43, %v616_v18  ;;  %v588_v3 = vrot.slane %v3956_v17, 2 }
 0x147   :  { %v1059_v46 = vadd.f32 %v3992_v9, %v1035_v45  ;;  %1156 = vrot.lane.b32.xlu1 %v1117_v27, %s3348_s2  ;;  %v1285_v61 = vpack.c.b16 %v1273_v11, %v1273_v11  ;;  %v827_v4 = vadd.f32 %v795_v35, %v617_v5  ;;  %v796_v39 = vrot.slane %v721_v40, 3 }
 0x148   :  { %v929_v22 = vpop.f32.mrf.mxu0  ;;  %v1074_v23 = vmax.f32 %v1058_v19, 0.0  ;;  %v1286_v15 = vpack.c.b16 %v1274_v51, %v1274_v51  ;;  %v798_v32 = vrot.slane %v750_v56, 3  ;;  %v410_v10 = vadd.f32 %v376_v58, %v3899_v28 }
 0x149   :  { %v1002_v1 = vrot.slane %v929_v22, 4  ;;  %v958_v30 = vpop.f32.mrf.mxu1  ;;  %v1075_v38 = vmax.f32 %v1059_v46, 0.0  ;;  %v1305_v17 = vsel %vm1303_vm5, %v1285_v61, 0  ;;  %v408_v27 = vadd.f32 %v4130_v2, %v3889_v25 }
 0x14a   :  { %v1004_v7 = vrot.slane %v958_v30, 4  ;;  %v1096_v29 = vmul.f32 %v4001_v34, %v1074_v23  ;;  %v1308_v59 = vsel %vm1303_vm5, %v1286_v15, 0  ;;  %1312 = vmatpush.bf16.msra.mxu2 %v1305_v17  ;;  %v589_v5 = vsel %vm559_vm2, %v584_v26, %v588_v3 }
 0x14b   :  { %v1003_v50 = vsel %vm979_vm4, %v998_v42, %v1002_v1  ;;  %v1097_v47 = vmul.f32 %v4021_v48, %v1075_v38  ;;  %1331 = vmatpush.bf16.msra.mxu3 %v1308_v59  ;;  %v587_v42 = vsel %vm559_vm2, %v582_v20, %v586_v55  ;;  %v409_v13 = vadd.f32 %v379_v31, %v4918_v60 }
 0x14c   :  { %v1036_v62 = vadd.f32 %v1003_v50, %v826_v14  ;;  %v1005_v57 = vsel %vm979_vm4, %v1000_v52, %v1004_v7  ;;  %v4179_v0 = vadd.f32 %v4008_v33, %v1096_v29  ;;  %v4917_v52 = vld [vmem:[#allocation9_spill] sm:$0xff]  ;;  %v620_v58 = vadd.f32 %v586_v55, %v410_v10 }
 0x14d   :  { %v1037_v43 = vadd.f32 %v1005_v57, %v827_v4  ;;  %v1119_v45 = vadd.f32 %v4050_v41, %v1097_v47  ;;  %v411_v18 = vadd.f32 %v378_v49, %v4917_v52  ;;  %v797_v25 = vsel %vm769_vm3, %v792_v24, %v796_v39  ;;  %v3250_v57 = vld [vmem:[%s4898_s3 + $0x44] sm:$0xf]  ;;  %v2797_v52 = vld [vmem:[%s4898_s3 + $0x38] sm:$0xf0] }
 0x14e   :  { %v1060_v28 = vadd.f32 %v3983_v37, %v1036_v62  ;;  %1158 = vrot.lane.b32.xlu2 %v4179_v0, %s3348_s2  ;;  %v618_v63 = vadd.f32 %v587_v42, %v408_v27  ;;  %v799_v49 = vsel %vm769_vm3, %v794_v12, %v798_v32  ;;  %v619_v19 = vadd.f32 %v589_v5, %v409_v13  ;;  %v3251_v62 = vld [vmem:[%s4898_s3 + $0x44] sm:$0xf0]  ;;  %v2795_v42 = vld [vmem:[%s4898_s3 + $0x30] sm:$0xf] }
 0x14f   :  { %v1061_v20 = vadd.f32 %v3992_v9, %v1037_v43  ;;  %1160 = vrot.lane.b32.xlu0 %v1119_v45, %s3348_s2  ;;  %v621_v8 = vadd.f32 %v588_v3, %v411_v18  ;;  %v830_v54 = vadd.f32 %v796_v39, %v620_v58  ;;  %v3249_v43 = vld [vmem:[%s4898_s3 + $0x34] sm:$0xf0]  ;;  %v3248_v45 = vld [vmem:[%s4898_s3 + $0x34] sm:$0xf]  ;;  %v2878_v18 = vld [vmem:[%s4898_s3 + $0x100] sm:$0x33] }
 0x150   :  { %v931_v26 = vpop.f32.mrf.mxu0  ;;  %v1076_v2 = vmax.f32 %v1060_v28, 0.0  ;;  %v828_v21 = vadd.f32 %v797_v25, %v618_v63  ;;  %v829_v11 = vadd.f32 %v799_v49, %v619_v19  ;;  %v2796_v27 = vor.u32 %v3249_v43, %v2795_v42  ;;  %v2913_v63 = vld [vmem:[%s4898_s3 + $0xf0] sm:$0xf]  ;;  %v3270_v49 = vld [vmem:[%s4898_s3 + $0xf4] sm:$0xf] }
 0x151   :  { %v1006_v31 = vrot.slane %v931_v26, 4  ;;  %v960_v55 = vpop.f32.mrf.mxu1  ;;  %v1077_v35 = vmax.f32 %v1061_v20, 0.0  ;;  %v831_v40 = vadd.f32 %v798_v32, %v621_v8  ;;  %v2800_v5 = vor.u32 %v3248_v45, %v2797_v52  ;;  %v3271_v8 = vld [vmem:[%s4898_s3 + $0xf4] sm:$0xf0]  ;;  %v3242_v42 = vld [vmem:[%s4898_s3 + $0x4] sm:$0xf] }
 0x152   :  { %v1008_v24 = vrot.slane %v960_v55, 4  ;;  %v1098_v46 = vmul.f32 %v4001_v34, %v1076_v2  ;;  %v1540_v28 = vunpack.c.l.b16 %v2878_v18  ;;  %v1541_v60 = vunpack.c.h.b16 %v2878_v18  ;;  %v2915_v2 = vld [vmem:[%s4898_s3 + $0xf8] sm:$0xf0]  ;;  %v3269_v55 = vld [vmem:[%s4898_s3 + $0xe4] sm:$0xf0] }
 0x153   :  { %v1007_v51 = vsel %vm979_vm4, %v1002_v1, %v1006_v31  ;;  %v1040_v14 = vadd.f32 %v1006_v31, %v830_v54  ;;  %v1099_v16 = vmul.f32 %v4021_v48, %v1077_v35  ;;  %v2914_v26 = vor.u32 %v3271_v8, %v2913_v63  ;;  %v2905_v31 = vld [vmem:[%s4898_s3 + $0xe0] sm:$0xf]  ;;  %v3268_v35 = vld [vmem:[%s4898_s3 + $0xe4] sm:$0xf]  ;;  %v2773_v43 = vld [vmem:[%s4898_s3 + $0x8] sm:$0xf0] }
 0x154   :  { %v1038_v3 = vadd.f32 %v1007_v51, %v828_v21  ;;  %v1009_v12 = vsel %vm979_vm4, %v1004_v7, %v1008_v24  ;;  %v1041_v22 = vadd.f32 %v1008_v24, %v831_v40  ;;  %v4213_v23 = vadd.f32 %v4008_v33, %v1098_v46  ;;  %v2907_v40 = vld [vmem:[%s4898_s3 + $0xe8] sm:$0xf0]  ;;  %v2787_v46 = vld [vmem:[%s4898_s3 + $0x20] sm:$0xf]  ;;  %v3246_v51 = vld [vmem:[%s4898_s3 + $0x24] sm:$0xf] }
 0x155   :  { %v1064_v56 = vadd.f32 %v3983_v37, %v1040_v14  ;;  %v1039_v30 = vadd.f32 %v1009_v12, %v829_v11  ;;  %v1121_v38 = vadd.f32 %v4050_v41, %v1099_v16  ;;  %v1552_v13 = vpack.c.b16 %v1540_v28, %v1540_v28  ;;  %v3247_v11 = vld [vmem:[%s4898_s3 + $0x24] sm:$0xf0]  ;;  %v2789_v16 = vld [vmem:[%s4898_s3 + $0x28] sm:$0xf0]  ;;  %v3267_v12 = vld [vmem:[%s4898_s3 + $0xd4] sm:$0xf0] }
 0x156   :  { %v1062_v61 = vadd.f32 %v3983_v37, %v1038_v3  ;;  %1162 = vrot.lane.b32.xlu1 %v4213_v23, %s3348_s2  ;;  %v1065_v4 = vadd.f32 %v3992_v9, %v1041_v22  ;;  %v1553_v58 = vpack.c.b16 %v1541_v60, %v1541_v60  ;;  %v2918_v19 = vor.u32 %v3270_v49, %v2915_v2  ;;  %v2897_v3 = vld [vmem:[%s4898_s3 + $0xd0] sm:$0xf]  ;;  %v3263_v52 = vld [vmem:[%s4898_s3 + $0xb4] sm:$0xf0]  ;;  %v3262_v18 = vld [vmem:[%s4898_s3 + $0xb4] sm:$0xf] }
 0x157   :  { %v1080_v1 = vmax.f32 %v1064_v56, 0.0  ;;  %v1063_v15 = vadd.f32 %v3992_v9, %v1039_v30  ;;  %1164 = vrot.lane.b32.xlu2 %v1121_v38, %s3348_s2  ;;  %v1565_v25 = vsel %vm1303_vm5, %v1552_v13, 0  ;;  %v2906_v21 = vor.u32 %v3269_v55, %v2905_v31  ;;  %v3266_v30 = vld [vmem:[%s4898_s3 + $0xd4] sm:$0xf]  ;;  %v2899_v38 = vld [vmem:[%s4898_s3 + $0xd8] sm:$0xf0] }
 0x158   :  { %v1078_v39 = vmax.f32 %v1062_v61, 0.0  ;;  %v1081_v17 = vmax.f32 %v1065_v4, 0.0  ;;  %v1568_v20 = vsel %vm1303_vm5, %v1553_v58, 0  ;;  %1572 = vmatpush.bf16.msrb.mxu0 %v1565_v25  ;;  %v2910_v24 = vor.u32 %v3268_v35, %v2907_v40  ;;  %v2779_v4 = vld [vmem:[%s4898_s3 + $0x10] sm:$0xf] }
 0x159   :  { %v1079_v7 = vmax.f32 %v1063_v15, 0.0  ;;  %v1102_v29 = vmul.f32 %v4001_v34, %v1080_v1  ;;  %1591 = vmatpush.bf16.msrb.mxu1 %v1568_v20  ;;  %v2788_v14 = vor.u32 %v3247_v11, %v2787_v46  ;;  %v2792_v22 = vor.u32 %v3246_v51, %v2789_v16  ;;  %v2881_v45 = vld [vmem:[%s4898_s3 + $0xb0] sm:$0xf] }
 0x15a   :  { %v1100_v50 = vmul.f32 %v4001_v34, %v1078_v39  ;;  %v1103_v9 = vmul.f32 %v4021_v48, %v1081_v17  ;;  %v2898_v56 = vor.u32 %v3267_v12, %v2897_v3  ;;  %v2902_v61 = vor.u32 %v3266_v30, %v2899_v38  ;;  %v3245_v39 = vld [vmem:[%s4898_s3 + $0x14] sm:$0xf0]  ;;  %v2889_v17 = vld [vmem:[%s4898_s3 + $0xc0] sm:$0xf]  ;;  %v2988_v46 = vld [vmem:[%s4898_s3 + $0x1b0] sm:$0x33] }
 0x15b   :  { %v1101_v47 = vmul.f32 %v4021_v48, %v1079_v7  ;;  %v4227_v37 = vadd.f32 %v4008_v33, %v1102_v29  ;;  %v2805_v48 = vld [vmem:[%s4898_s3 + $0x48] sm:$0xf0]  ;;  %v3244_v7 = vld [vmem:[%s4898_s3 + $0x14] sm:$0xf]  ;;  %v2882_v28 = vor.u32 %v3263_v52, %v2881_v45  ;;  %v1838_v51 = vunpack.c.l.b16 %v2988_v46 }
 0x15c   :  { %v4230_v59 = vadd.f32 %v4008_v33, %v1100_v50  ;;  %v1125_v34 = vadd.f32 %v4050_v41, %v1103_v9  ;;  %v2803_v33 = vld [vmem:[%s4898_s3 + $0x40] sm:$0xf]  ;;  %1573 = vmatpush.bf16.msrb.mxu0 %v2914_v26  ;;  %v2780_v50 = vor.u32 %v3245_v39, %v2779_v4  ;;  %v2823_v26 = vld [vmem:[%s4898_s3 + $0xa8] sm:$0x33]  ;;  %v2858_v4 = vld [vmem:[%s4898_s3 + $0x98] sm:$0xf] }
 0x15d   :  { %v1123_v32 = vadd.f32 %v4050_v41, %v1101_v47  ;;  %v2804_v10 = vor.u32 %v3251_v62, %v2803_v33  ;;  %v2808_v41 = vor.u32 %v3250_v57, %v2805_v48  ;;  %1592 = vmatpush.bf16.msrb.mxu1 %v2918_v19  ;;  %v2781_v47 = vld [vmem:[%s4898_s3 + $0x18] sm:$0xf0]  ;;  %v3264_v62 = vld [vmem:[%s4898_s3 + $0xc4] sm:$0xf]  ;;  %v2891_v57 = vld [vmem:[%s4898_s3 + $0xc8] sm:$0xf0]  ;;  %v1391_v2 = vunpack.c.l.b16 %v2823_v26 }
 0x15e   :  { %1166 = vrot.lane.b32.xlu0 %v4230_v59, %s3348_s2  ;;  %v3243_v48 = vld [vmem:[%s4898_s3 + $0x4] sm:$0xf0]  ;;  %v1392_v19 = vunpack.c.h.b16 %v2823_v26  ;;  %v1850_v16 = vpack.c.b16 %v1838_v51, %v1838_v51 }
 0x15f   :  { %1168 = vrot.lane.b32.xlu1 %v1123_v32, %s3348_s2  ;;  %1170 = vrot.lane.b32.xlu2 %v4227_v37, %s3348_s2  ;;  %v3265_v32 = vld [vmem:[%s4898_s3 + $0xc4] sm:$0xf0]  ;;  %v1403_v31 = vpack.c.b16 %v1391_v2, %v1391_v2 }
 0x160   :  { %1313 = vmatpush.bf16.msra.mxu2 %v2804_v10  ;;  %1332 = vmatpush.bf16.msra.mxu3 %v2808_v41  ;;  %v2890_v33 = vor.u32 %v3265_v32, %v2889_v17  ;;  %v2894_v10 = vor.u32 %v3264_v62, %v2891_v57  ;;  %v1404_v55 = vpack.c.b16 %v1392_v19, %v1392_v19  ;;  %v2850_v17 = vld [vmem:[%s4898_s3 + $0x88] sm:$0xf]  ;;  %v3259_v32 = vld [vmem:[%s4898_s3 + $0x8c] sm:$0xf0]  ;;  %v2852_v62 = vld [vmem:[%s4898_s3 + $0x90] sm:$0xf0] }
 0x161   :  { %1574 = vmatpush.bf16.msrb.mxu0 %v2906_v21  ;;  %1593 = vmatpush.bf16.msrb.mxu1 %v2910_v24  ;;  %v3023_v57 = vld [vmem:[%s4898_s3 + $0x1a0] sm:$0xf]  ;;  %v3287_v19 = vld [vmem:[%s4898_s3 + $0x184] sm:$0xf0] }
 0x162   :  { %v1419_v40 = vsel %vm1303_vm5, %v1404_v55, 0  ;;  %v2834_v55 = vld [vmem:[%s4898_s3 + $0x68] sm:$0xf] }
 0x164   :  { %1314 = vmatpush.bf16.msra.mxu2 %v2796_v27  ;;  %1333 = vmatpush.bf16.msra.mxu3 %v2800_v5  ;;  %v2776_v27 = vor.u32 %v3242_v42, %v2773_v43  ;;  %v2883_v5 = vld [vmem:[%s4898_s3 + $0xb8] sm:$0xf0]  ;;  %v3290_v42 = vld [vmem:[%s4898_s3 + $0x1a4] sm:$0xf]  ;;  %v3025_v43 = vld [vmem:[%s4898_s3 + $0x1a8] sm:$0xf0] }
 0x165   :  { %1575 = vmatpush.bf16.msrb.mxu0 %v2898_v56  ;;  %1594 = vmatpush.bf16.msrb.mxu1 %v2902_v61  ;;  %v2886_v60 = vor.u32 %v3262_v18, %v2883_v5  ;;  %v3028_v52 = vor.u32 %v3290_v42, %v3025_v43  ;;  %v2842_v18 = vld [vmem:[%s4898_s3 + $0x78] sm:$0xf]  ;;  %v3257_v5 = vld [vmem:[%s4898_s3 + $0x7c] sm:$0xf0] }
 0x166   :  { %1172 = vrot.lane.b32.xlu0 %v1125_v34, %s3348_s2  ;;  %v2784_v34 = vor.u32 %v3244_v7, %v2781_v47  ;;  %v2860_v47 = vld [vmem:[%s4898_s3 + $0xa0] sm:$0xf0]  ;;  %v2843_v26 = vor.u32 %v3257_v5, %v2842_v18 }
 0x168   :  { %1315 = vmatpush.bf16.msra.mxu2 %v2788_v14  ;;  %1334 = vmatpush.bf16.msra.mxu3 %v2792_v22  ;;  %v1839_v14 = vunpack.c.h.b16 %v2988_v46 }
 0x169   :  { %1576 = vmatpush.bf16.msrb.mxu0 %v2890_v33  ;;  %1595 = vmatpush.bf16.msrb.mxu1 %v2894_v10  ;;  %v3258_v33 = vld [vmem:[%s4898_s3 + $0x8c] sm:$0xf] }
 0x16a   :  { %v1851_v3 = vpack.c.b16 %v1839_v14, %v1839_v14  ;;  %v2999_v14 = vld [vmem:[%s4898_s3 + $0x170] sm:$0xf] }
 0x16c   :  { %1316 = vmatpush.bf16.msra.mxu2 %v2780_v50  ;;  %1335 = vmatpush.bf16.msra.mxu3 %v2784_v34  ;;  %v1866_v38 = vsel %vm1303_vm5, %v1851_v3, 0  ;;  %v3284_v3 = vld [vmem:[%s4898_s3 + $0x174] sm:$0xf] }
 0x16d   :  { %1577 = vmatpush.bf16.msrb.mxu0 %v2882_v28  ;;  %1596 = vmatpush.bf16.msrb.mxu1 %v2886_v60  ;;  %v3256_v60 = vld [vmem:[%s4898_s3 + $0x7c] sm:$0xf] }
 0x170   :  { %1336 = vmatpush.bf16.msra.mxu3 %v2776_v27 }
 0x171   :  { %1889 = vmatpush.bf16.msra.mxu1 %v1866_v38 }
 0x174   :  { %1442 = vmatpush.bf16.msrb.mxu3 %v1419_v40  ;;  %v3254_v40 = vld [vmem:[%s4898_s3 + $0x6c] sm:$0xf] }
 0x175   :  { %1890 = vmatpush.bf16.msra.mxu1 %v3028_v52 }
 0x198   :  { %v1151_v54 = vpop.permute.xlu2 %1150 }
 0x1a0   :  { %v1143_v1 = vpop.permute.xlu0 %1142  ;;  %v1153_v15 = vpop.permute.xlu2 %1152 }
 0x1a1   :  { %v1177_v29 = vsel %vm1174_vm6, %v1151_v54, %v1153_v15  ;;  %v3349_v54 = vmov 0.0  }
 0x1a2   :  { %v1193_v9 = vmax.f32 %v4106_v6, %v1177_v29  ;;  %v2771_v6 = vld [vmem:[%s4898_s3] sm:$0xf]  ;;  %1209 = vst.msk [vmem:[#allocation2 + $0x3c] sm:$0xf] %vm1207_vm8, %v3349_v54 }
 0x1a3   :  { %v2772_v41 = vor.u32 %v3243_v48, %v2771_v6  ;;  %v3261_v29 = vld [vmem:[%s4898_s3 + $0x9c] sm:$0xf0]  ;;  %v2851_v48 = vor.u32 %v3259_v32, %v2850_v17  ;;  %2039 = vst.msk [vmem:[#allocation3 + $0x1c] sm:$0xf] %vm2037_vm9, %v3349_v54 }
 0x1a4   :  { %1202 = vst.msk [vmem:[#allocation2 + $0x10] sm:$0xff] %vm1199_vm7, %v1193_v9  ;;  %v2859_v50 = vor.u32 %v3261_v29, %v2858_v4  ;;  %v3283_v29 = vld [vmem:[%s4898_s3 + $0x164] sm:$0xf0]  ;;  %v3292_v54 = vld [vmem:[%s4900_s5] sm:$0xff] }
 0x1a5   :  { %1317 = vmatpush.bf16.msra.mxu2 %v2772_v41  ;;  %v3291_v41 = vld [vmem:[%s4898_s3 + $0x1a4] sm:$0xf0] }
 0x1a6   :  { %v3024_v27 = vor.u32 %v3291_v41, %v3023_v57  ;;  %v2968_v41 = vld [vmem:[%s4898_s3 + $0x148] sm:$0xf] }
 0x1a8   :  { %v1145_v13 = vpop.permute.xlu0 %1144  ;;  %v1147_v58 = vpop.permute.xlu1 %1146 }
 0x1a9   :  { %v1175_v25 = vsel %vm1174_vm6, %v1143_v1, %v1145_v13  ;;  %v1159_v11 = vpop.permute.xlu2 %1158  ;;  %v2844_v13 = vld [vmem:[%s4898_s3 + $0x80] sm:$0xf0] }
 0x1aa   :  { %v1191_v20 = vmax.f32 %v4026_v53, %v1175_v25  ;;  %v3289_v25 = vld [vmem:[%s4898_s3 + $0x194] sm:$0xf0] }
 0x1ac   :  { %1200 = vst.msk [vmem:[#allocation2] sm:$0xff] %vm1199_vm7, %v1191_v20  ;;  %v2855_v20 = vor.u32 %v3258_v33, %v2852_v62  ;;  %v2933_v62 = vld [vmem:[%s4898_s3 + $0x158] sm:$0x33] }
 0x1b0   :  { %v1149_v63 = vpop.permute.xlu1 %1148 }
 0x1b1   :  { %v1176_v8 = vsel %vm1174_vm6, %v1147_v58, %v1149_v63  ;;  %v1165_v10 = vpop.permute.xlu2 %1164  ;;  %v3015_v58 = vld [vmem:[%s4898_s3 + $0x190] sm:$0xf]  ;;  %v3288_v63 = vld [vmem:[%s4898_s3 + $0x194] sm:$0xf] }
 0x1b2   :  { %v1192_v49 = vmax.f32 %v4065_v44, %v1176_v8  ;;  %v1416_v44 = vsel %vm1303_vm5, %v1403_v31, 0  ;;  %v3017_v8 = vld [vmem:[%s4898_s3 + $0x198] sm:$0xf0]  ;;  %v3009_v31 = vld [vmem:[%s4898_s3 + $0x188] sm:$0xf0] }
 0x1b3   :  { %1423 = vmatpush.bf16.msrb.mxu2 %v1416_v44  ;;  %v3020_v2 = vor.u32 %v3288_v63, %v3017_v8 }
 0x1b4   :  { %1201 = vst.msk [vmem:[#allocation2 + $0x8] sm:$0xff] %vm1199_vm7, %v1192_v49  ;;  %v3007_v49 = vld [vmem:[%s4898_s3 + $0x180] sm:$0xf] }
 0x1b5   :  { %v3008_v44 = vor.u32 %v3287_v19, %v3007_v49  ;;  %1891 = vmatpush.bf16.msra.mxu1 %v3020_v2 }
 0x1b7   :  { %1424 = vmatpush.bf16.msrb.mxu2 %v2859_v50  ;;  %v2993_v50 = vld [vmem:[%s4898_s3 + $0x168] sm:$0xf0] }
 0x1b8   :  { %v1155_v53 = vpop.permute.xlu0 %1154 }
 0x1b9   :  { %v1157_v35 = vpop.permute.xlu1 %1156  ;;  %v1171_v32 = vpop.permute.xlu2 %1170 }
 0x1ba   :  { %v1178_v21 = vsel %vm1174_vm6, %v1155_v53, %v1157_v35  ;;  %v3286_v53 = vld [vmem:[%s4898_s3 + $0x184] sm:$0xf]  ;;  %v3255_v35 = vld [vmem:[%s4898_s3 + $0x6c] sm:$0xf0] }
 0x1bb   :  { %v1194_v24 = vmax.f32 %v4147_v36, %v1178_v21  ;;  %v1210_v22 = vld [vmem:[#allocation2] ss:$2 sm:$0xff]  ;;  %v1218_v56 = vld [vmem:[#allocation2 + $0x1] ss:$2 sm:$0xff]  ;;  %v1863_v36 = vsel %vm1303_vm5, %v1850_v16, 0  ;;  %1425 = vmatpush.bf16.msrb.mxu2 %v2851_v48  ;;  %v2847_v21 = vor.u32 %v3256_v60, %v2844_v13  ;;  %v2835_v51 = vor.u32 %v3255_v35, %v2834_v55 }
 0x1bc   :  { %1870 = vmatpush.bf16.msra.mxu0 %v1863_v36  ;;  %v1225_v39 = vmax.f32 %v1210_v22, %v1218_v56  ;;  %v3285_v16 = vld [vmem:[%s4898_s3 + $0x174] sm:$0xf0]  ;;  %v3001_v22 = vld [vmem:[%s4898_s3 + $0x178] sm:$0xf0]  ;;  %v3279_v13 = vld [vmem:[%s4898_s3 + $0x13c] sm:$0xf0] }
 0x1bd   :  { %1203 = vst.msk [vmem:[#allocation2 + $0x18] sm:$0xff] %vm1199_vm7, %v1194_v24  ;;  %v2836_v24 = vld [vmem:[%s4898_s3 + $0x70] sm:$0xf0]  ;;  %v2826_v56 = vld [vmem:[%s4898_s3 + $0x58] sm:$0xf]  ;;  %v3004_v4 = vor.u32 %v3284_v3, %v3001_v22 }
 0x1be   :  { %v2960_v60 = vld [vmem:[%s4898_s3 + $0x138] sm:$0xf]  ;;  %v3277_v55 = vld [vmem:[%s4898_s3 + $0x12c] sm:$0xf0]  ;;  %v3276_v35 = vld [vmem:[%s4898_s3 + $0x12c] sm:$0xf] }
 0x1bf   :  { %1426 = vmatpush.bf16.msrb.mxu2 %v2843_v26  ;;  %v2961_v63 = vor.u32 %v3279_v13, %v2960_v60  ;;  %v2936_v3 = vld [vmem:[%s4898_s3 + $0x108] sm:$0xf]  ;;  %v3272_v22 = vld [vmem:[%s4898_s3 + $0x10c] sm:$0xf] }
 0x1c0   :  { %1871 = vmatpush.bf16.msra.mxu0 %v3024_v27  ;;  %v3280_v27 = vld [vmem:[%s4898_s3 + $0x14c] sm:$0xf] }
 0x1c1   :  { %v1161_v12 = vpop.permute.xlu0 %1160 }
 0x1c2   :  { %v1179_v30 = vsel %vm1174_vm6, %v1159_v11, %v1161_v12  ;;  %v3012_v11 = vor.u32 %v3286_v53, %v3009_v31  ;;  %v2952_v31 = vld [vmem:[%s4898_s3 + $0x128] sm:$0xf] }
 0x1c3   :  { %v1195_v61 = vmax.f32 %v4179_v0, %v1179_v30  ;;  %v3260_v0 = vld [vmem:[%s4898_s3 + $0x9c] sm:$0xf]  ;;  %v3253_v30 = vld [vmem:[%s4898_s3 + $0x5c] sm:$0xf0]  ;;  %1427 = vmatpush.bf16.msrb.mxu2 %v2835_v51  ;;  %v2946_v51 = vld [vmem:[%s4898_s3 + $0x120] sm:$0xf0] }
 0x1c4   :  { %v1212_v1 = vld [vmem:[#allocation2 + $0x10] ss:$2 sm:$0xff]  ;;  %v1220_v15 = vld [vmem:[#allocation2 + $0x11] ss:$2 sm:$0xff]  ;;  %v2863_v34 = vor.u32 %v3260_v0, %v2860_v47  ;;  %1892 = vmatpush.bf16.msra.mxu1 %v3012_v11  ;;  %v3282_v0 = vld [vmem:[%s4898_s3 + $0x164] sm:$0xf] }
 0x1c5   :  { %v1226_v7 = vmax.f32 %v1212_v1, %v1220_v15  ;;  %1204 = vst.msk [vmem:[#allocation2 + $0x20] sm:$0xff] %vm1199_vm7, %v1195_v61  ;;  %v2839_v61 = vor.u32 %v3254_v40, %v2836_v24  ;;  %v3000_v1 = vor.u32 %v3285_v16, %v2999_v14  ;;  %v3252_v15 = vld [vmem:[%s4898_s3 + $0x5c] sm:$0xf]  ;;  %v2996_v33 = vor.u32 %v3282_v0, %v2993_v50  ;;  %v2944_v40 = vld [vmem:[%s4898_s3 + $0x118] sm:$0xf] }
 0x1c6   :  { %1443 = vmatpush.bf16.msrb.mxu3 %v2863_v34  ;;  %v3275_v24 = vld [vmem:[%s4898_s3 + $0x11c] sm:$0xf0]  ;;  %v3274_v11 = vld [vmem:[%s4898_s3 + $0x11c] sm:$0xf] }
 0x1c7   :  { %v4411_v9 = vpack.c.bf16 %v1226_v7, %v1225_v39  ;;  %v2827_v39 = vor.u32 %v3253_v30, %v2826_v56  ;;  %v2828_v7 = vld [vmem:[%s4898_s3 + $0x60] sm:$0xf0]  ;;  %v2945_v14 = vor.u32 %v3275_v24, %v2944_v40  ;;  %v2949_v16 = vor.u32 %v3274_v11, %v2946_v51  ;;  %v2938_v56 = vld [vmem:[%s4898_s3 + $0x110] sm:$0xf0] }
 0x1c8   :  { %v1163_v6 = vpop.permute.xlu1 %1162  ;;  %v2831_v47 = vor.u32 %v3252_v15, %v2828_v7  ;;  %1893 = vmatpush.bf16.msra.mxu1 %v3004_v4 }
 0x1c9   :  { %2809 = vmatmul.msk.bf16.vlgmr.msra.gmra.mxu2 %vm1199_vm7, %v4411_v9  ;;  %2811 = vmatmul.msk.bf16.vlgmr.msra.gmra.mxu3 %vm1199_vm7, %v4411_v9  ;;  %v1180_v45 = vsel %vm1174_vm6, %v1163_v6, %v1165_v10  ;;  %v1689_v10 = vunpack.c.l.b16 %v2933_v62  ;;  %v1690_v6 = vunpack.c.h.b16 %v2933_v62 }
 0x1ca   :  { %2919 = vmatmul.msk.bf16.vlgmr.msrb.gmra.mxu0 %vm1199_vm7, %v4411_v9  ;;  %2921 = vmatmul.msk.bf16.vlgmr.msrb.gmra.mxu1 %vm1199_vm7, %v4411_v9  ;;  %v1196_v28 = vmax.f32 %v4213_v23, %v1180_v45  ;;  %v3016_v23 = vor.u32 %v3289_v25, %v3015_v58  ;;  %v3281_v45 = vld [vmem:[%s4898_s3 + $0x14c] sm:$0xf0]  ;;  %v3278_v58 = vld [vmem:[%s4898_s3 + $0x13c] sm:$0xf]  ;;  %v2962_v25 = vld [vmem:[%s4898_s3 + $0x140] sm:$0xf0] }
 0x1cb   :  { %1444 = vmatpush.bf16.msrb.mxu3 %v2855_v20  ;;  %1428 = vmatpush.bf16.msrb.mxu2 %v2827_v39  ;;  %v1701_v42 = vpack.c.b16 %v1689_v10, %v1689_v10  ;;  %v1702_v43 = vpack.c.b16 %v1690_v6, %v1690_v6  ;;  %v2969_v5 = vor.u32 %v3281_v45, %v2968_v41 }
 0x1cc   :  { %1205 = vst.msk [vmem:[#allocation2 + $0x28] sm:$0xff] %vm1199_vm7, %v1196_v28  ;;  %1872 = vmatpush.bf16.msra.mxu0 %v3016_v23  ;;  %1894 = vmatpush.bf16.msra.mxu1 %v2996_v33  ;;  %v2965_v8 = vor.u32 %v3278_v58, %v2962_v25 }
 0x1cd   :  { %v1714_v52 = vsel %vm1303_vm5, %v1701_v42, 0  ;;  %v1717_v18 = vsel %vm1303_vm5, %v1702_v43, 0 }
 0x1cf   :  { %1445 = vmatpush.bf16.msrb.mxu3 %v2847_v21  ;;  %1721 = vmatpush.bf16.msra.mxu2 %v1714_v52  ;;  %v2953_v21 = vor.u32 %v3277_v55, %v2952_v31 }
 0x1d0   :  { %v1167_v46 = vpop.permute.xlu0 %1166  ;;  %1873 = vmatpush.bf16.msra.mxu0 %v3008_v44  ;;  %v2954_v44 = vld [vmem:[%s4898_s3 + $0x130] sm:$0xf0] }
 0x1d1   :  { %v1169_v12 = vpop.permute.xlu1 %1168 }
 0x1d2   :  { %v1181_v36 = vsel %vm1174_vm6, %v1167_v46, %v1169_v12  ;;  %v2957_v46 = vor.u32 %v3276_v35, %v2954_v44  ;;  %v3273_v12 = vld [vmem:[%s4898_s3 + $0x10c] sm:$0xf0] }
 0x1d3   :  { %v1197_v38 = vmax.f32 %v4230_v59, %v1181_v36  ;;  %v2991_v59 = vld [vmem:[%s4898_s3 + $0x160] sm:$0xf]  ;;  %1446 = vmatpush.bf16.msrb.mxu3 %v2839_v61  ;;  %1722 = vmatpush.bf16.msra.mxu2 %v2969_v5  ;;  %v2937_v30 = vor.u32 %v3273_v12, %v2936_v3  ;;  %v2941_v36 = vor.u32 %v3272_v22, %v2938_v56 }
 0x1d4   :  { %1874 = vmatpush.bf16.msra.mxu0 %v3000_v1  ;;  %v2992_v17 = vor.u32 %v3283_v29, %v2991_v59  ;;  %v1214_v20 = vld [vmem:[#allocation2 + $0x20] ss:$2 sm:$0xff]  ;;  %v1222_v23 = vld [vmem:[#allocation2 + $0x21] ss:$2 sm:$0xff] }
 0x1d5   :  { %1206 = vst.msk [vmem:[#allocation2 + $0x30] sm:$0xff] %vm1199_vm7, %v1197_v38  ;;  %v1227_v2 = vmax.f32 %v1214_v20, %v1222_v23 }
 0x1d7   :  { %1447 = vmatpush.bf16.msrb.mxu3 %v2831_v47  ;;  %1723 = vmatpush.bf16.msra.mxu2 %v2961_v63 }
 0x1d8   :  { %v1173_v34 = vpop.permute.xlu0 %1172  ;;  %1875 = vmatpush.bf16.msra.mxu0 %v2992_v17 }
 0x1d9   :  { %v1182_v57 = vsel %vm1174_vm6, %v1171_v32, %v1173_v34 }
 0x1da   :  { %v1198_v48 = vmax.f32 %v4227_v37, %v1182_v57  ;;  %v2970_v37 = vld [vmem:[%s4898_s3 + $0x150] sm:$0xf0] }
 0x1db   :  { %1740 = vmatpush.bf16.msra.mxu3 %v1717_v18  ;;  %v2973_v28 = vor.u32 %v3280_v27, %v2970_v37  ;;  %1724 = vmatpush.bf16.msra.mxu2 %v2953_v21 }
 0x1dc   :  { %1208 = vst.msk [vmem:[#allocation2 + $0x38] sm:$0xf] %vm1207_vm8, %v1198_v48 }
 0x1df   :  { %1741 = vmatpush.bf16.msra.mxu3 %v2973_v28  ;;  %1725 = vmatpush.bf16.msra.mxu2 %v2945_v14 }
 0x1e3   :  { %v1216_v49 = vld [vmem:[#allocation2 + $0x30] ss:$2 sm:$0xff]  ;;  %v1224_v26 = vld [vmem:[#allocation2 + $0x31] ss:$2 sm:$0xff]  ;;  %1742 = vmatpush.bf16.msra.mxu3 %v2965_v8  ;;  %1726 = vmatpush.bf16.msra.mxu2 %v2937_v30 }
 0x1e4   :  { %v1228_v19 = vmax.f32 %v1216_v49, %v1224_v26 }
 0x1e6   :  { %v1230_v53 = vpack.c.bf16 %v1228_v19, %v1227_v2  ;;  %v1944_v2 = vld [vmem:[%s4899_s4] sm:$0x77]  ;;  %s3350_s4 = smov 48  }
 0x1e7   :  { %1743 = vmatpush.bf16.msra.mxu3 %v2957_v46  ;;  %v1947_v24 = vperm.slane %v1944_v2, 4  ;;  %v1946_v46 = vperm.slane %v1944_v2, 0 }
 0x1e8   :  { %2810 = vmatmul.msk.bf16.gmra.mxu2 %vm1199_vm7, %v1230_v53  ;;  %2812 = vmatmul.msk.bf16.gmra.mxu3 %vm1199_vm7, %v1230_v53 }
 0x1e9   :  { %2920 = vmatmul.msk.bf16.gmra.mxu0 %vm1199_vm7, %v1230_v53  ;;  %2922 = vmatmul.msk.bf16.gmra.mxu1 %vm1199_vm7, %v1230_v53 }
 0x1eb   :  { %1744 = vmatpush.bf16.msra.mxu3 %v2949_v16 }
 0x1ef   :  { %1745 = vmatpush.bf16.msra.mxu3 %v2941_v36 }
 0x1f8   :  { %2864 = vmatmul.msk.bf16.vlgmr.msrb.gmra.mxu2 %vm1199_vm7, %v4411_v9  ;;  %2866 = vmatmul.msk.bf16.vlgmr.msrb.gmra.mxu3 %vm1199_vm7, %v4411_v9 }
 0x1f9   :  { %3029 = vmatmul.msk.bf16.vlgmr.msra.gmra.mxu0 %vm1199_vm7, %v4411_v9  ;;  %3031 = vmatmul.msk.bf16.vlgmr.msra.gmra.mxu1 %vm1199_vm7, %v4411_v9 }
 0x208   :  { %2865 = vmatmul.msk.bf16.gmra.mxu2 %vm1199_vm7, %v1230_v53  ;;  %2867 = vmatmul.msk.bf16.gmra.mxu3 %vm1199_vm7, %v1230_v53 }
 0x209   :  { %3030 = vmatmul.msk.bf16.gmra.mxu0 %vm1199_vm7, %v1230_v53  ;;  %3032 = vmatmul.msk.bf16.gmra.mxu1 %vm1199_vm7, %v1230_v53 }
 0x218   :  { %2974 = vmatmul.msk.bf16.vlgmr.msra.gmra.mxu2 %vm1199_vm7, %v4411_v9  ;;  %2976 = vmatmul.msk.bf16.vlgmr.msra.gmra.mxu3 %vm1199_vm7, %v4411_v9 }
 0x228   :  { %2975 = vmatmul.msk.bf16.gmra.mxu2 %vm1199_vm7, %v1230_v53  ;;  %2977 = vmatmul.msk.bf16.gmra.mxu3 %vm1199_vm7, %v1230_v53 }
 0x247   :  { %v1579_v7 = vpop.f32.mrf.mxu0  ;;  %v1598_v59 = vpop.f32.mrf.mxu1 }
 0x248   :  { %v1616_v63 = vrot.slane %v1579_v7, 2  ;;  %v1619_v8 = vrot.slane %v1598_v59, 2 }
 0x24c   :  { %v1319_v38 = vpop.f32.mrf.mxu2  ;;  %v1338_v61 = vpop.f32.mrf.mxu3 }
 0x24f   :  { %v1581_v9 = vpop.f32.mrf.mxu0  ;;  %v1600_v50 = vpop.f32.mrf.mxu1 }
 0x250   :  { %v1617_v52 = vrot.slane %v1581_v9, 2  ;;  %v1620_v18 = vrot.slane %v1600_v50, 2 }
 0x252   :  { %v1618_v31 = vsel %vm559_vm2, %v1616_v63, %v1617_v52  ;;  %v1621_v55 = vsel %vm559_vm2, %v1619_v8, %v1620_v18 }
 0x254   :  { %v4619_v1 = vpop.f32.mrf.mxu2  ;;  %v4621_v15 = vpop.f32.mrf.mxu3 }
 0x266   :  { %v4631_v32 = vpop.f32.mrf.mxu0  ;;  %v4633_v34 = vpop.f32.mrf.mxu1 }
 0x267   :  { %v1622_v60 = vrot.slane %v4631_v32, 2  ;;  %v1624_v13 = vrot.slane %v4633_v34, 2 }
 0x269   :  { %v1623_v35 = vsel %vm559_vm2, %v1617_v52, %v1622_v60  ;;  %v1625_v21 = vsel %vm559_vm2, %v1620_v18, %v1624_v13 }
 0x26b   :  { %v4623_v4 = vpop.f32.mrf.mxu2  ;;  %v4625_v39 = vpop.f32.mrf.mxu3 }
 0x26e   :  { %v4635_v57 = vpop.f32.mrf.mxu0  ;;  %v4637_v10 = vpop.f32.mrf.mxu1 }
 0x26f   :  { %v1626_v11 = vrot.slane %v4635_v57, 2  ;;  %v1628_v51 = vrot.slane %v4637_v10, 2 }
 0x273   :  { %v4627_v29 = vpop.f32.mrf.mxu2  ;;  %v4629_v0 = vpop.f32.mrf.mxu3 }
 0x276   :  { %v1877_v41 = vpop.f32.mrf.mxu0  ;;  %v1896_v42 = vpop.f32.mrf.mxu1 }
 0x277   :  { %v1914_v14 = vrot.slane %v1877_v41, 4  ;;  %v1917_v16 = vrot.slane %v1896_v42, 4  ;;  %v1969_v41 = vperm.slane %v1944_v2, 5  ;;  %v1968_v42 = vperm.slane %v1944_v2, 1 }
 0x27b   :  { %v1430_v47 = vpop.f32.mrf.mxu2  ;;  %v1449_v17 = vpop.f32.mrf.mxu3 }
 0x27c   :  { %v1467_v58 = vrot.slane %v1430_v47, 1  ;;  %v1470_v25 = vrot.slane %v1449_v17, 1  ;;  %v4674_v47 = vperm.slane %v1947_v24, 0  ;;  %v4676_v17 = vperm.slane %v1946_v46, 0 }
 0x27e   :  { %v4649_v20 = vpop.f32.mrf.mxu0  ;;  %v4651_v23 = vpop.f32.mrf.mxu1 }
 0x27f   :  { %v1915_v3 = vrot.slane %v4649_v20, 4  ;;  %v1918_v12 = vrot.slane %v4651_v23, 4 }
 0x283   :  { %v1432_v33 = vpop.f32.mrf.mxu2  ;;  %v1451_v62 = vpop.f32.mrf.mxu3 }
 0x284   :  { %v1468_v27 = vrot.slane %v1432_v33, 1  ;;  %v1471_v37 = vrot.slane %v1451_v62, 1 }
 0x286   :  { %v1469_v49 = vsel %vm349_vm1, %v1467_v58, %v1468_v27  ;;  %v1472_v26 = vsel %vm349_vm1, %v1470_v25, %v1471_v37  ;;  %v4678_v33 = vpop.f32.mrf.mxu0  ;;  %v4680_v62 = vpop.f32.mrf.mxu1  ;;  %v1983_v58 = vperm.slane %v1944_v2, 6  ;;  %v1982_v25 = vperm.slane %v1944_v2, 2 }
 0x287   :  { %v1489_v44 = vadd.f32 %v1469_v49, %v1319_v38  ;;  %v1490_v40 = vadd.f32 %v1472_v26, %v1338_v61  ;;  %v1920_v49 = vrot.slane %v4678_v33, 4  ;;  %v4692_v26 = vperm.slane %v1969_v41, 1 }
 0x288   :  { %v4698_v46 = vperm.slane %v1983_v58, 2 }
 0x289   :  { %v1638_v9 = vadd.f32 %v1618_v31, %v1489_v44  ;;  %v1639_v50 = vadd.f32 %v1621_v55, %v1490_v40 }
 0x28b   :  { %v4639_v6 = vpop.f32.mrf.mxu2  ;;  %v4641_v48 = vpop.f32.mrf.mxu3 }
 0x28c   :  { %v1473_v19 = vrot.slane %v4639_v6, 1  ;;  %v1475_v53 = vrot.slane %v4641_v48, 1 }
 0x28e   :  { %v1474_v22 = vsel %vm349_vm1, %v1468_v27, %v1473_v19  ;;  %v1476_v56 = vsel %vm349_vm1, %v1471_v37, %v1475_v53 }
 0x28f   :  { %v1491_v27 = vadd.f32 %v1474_v22, %v4619_v1  ;;  %v1492_v37 = vadd.f32 %v1476_v56, %v4621_v15  ;;  %v1922_v1 = vrot.slane %v4680_v62, 4  ;;  %v4694_v15 = vperm.slane %v1968_v42, 1 }
 0x291   :  { %v1640_v31 = vadd.f32 %v1623_v35, %v1491_v27  ;;  %v1641_v44 = vadd.f32 %v1625_v21, %v1492_v37  ;;  %v1921_v35 = vsel %vm979_vm4, %v1915_v3, %v1920_v49  ;;  %v1923_v21 = vsel %vm979_vm4, %v1918_v12, %v1922_v1 }
 0x292   :  { %v1627_v37 = vsel %vm559_vm2, %v1622_v60, %v1626_v11 }
 0x293   :  { %v4643_v43 = vpop.f32.mrf.mxu2  ;;  %v4645_v45 = vpop.f32.mrf.mxu3 }
 0x294   :  { %v1477_v20 = vrot.slane %v4643_v43, 1  ;;  %v1479_v23 = vrot.slane %v4645_v45, 1 }
 0x296   :  { %v1480_v22 = vsel %vm349_vm1, %v1475_v53, %v1479_v23 }
 0x297   :  { %v1494_v41 = vadd.f32 %v1480_v22, %v4625_v39 }
 0x29b   :  { %v1728_v5 = vpop.f32.mrf.mxu2  ;;  %v1747_v28 = vpop.f32.mrf.mxu3 }
 0x29c   :  { %v1765_v38 = vrot.slane %v1728_v5, 3  ;;  %v1768_v61 = vrot.slane %v1747_v28, 3  ;;  %v1916_v5 = vsel %vm979_vm4, %v1914_v14, %v1915_v3  ;;  %v1919_v28 = vsel %vm979_vm4, %v1917_v16, %v1918_v12 }
 0x29d   :  { %v4700_v14 = vperm.slane %v1982_v25, 2  ;;  %v1478_v16 = vsel %vm349_vm1, %v1473_v19, %v1477_v20  ;;  %v1495_v3 = vadd.f32 %v1477_v20, %v4627_v29  ;;  %v1496_v12 = vadd.f32 %v1479_v23, %v4629_v0 }
 0x2a3   :  { %v1730_v30 = vpop.f32.mrf.mxu2  ;;  %v1749_v36 = vpop.f32.mrf.mxu3 }
 0x2a4   :  { %v1766_v7 = vrot.slane %v1730_v30, 3  ;;  %v1769_v59 = vrot.slane %v1749_v36, 3 }
 0x2a6   :  { %v1767_v6 = vsel %vm769_vm3, %v1765_v38, %v1766_v7  ;;  %v1770_v48 = vsel %vm769_vm3, %v1768_v61, %v1769_v59 }
 0x2a7   :  { %v1787_v52 = vadd.f32 %v1767_v6, %v1638_v9  ;;  %v1788_v18 = vadd.f32 %v1770_v48, %v1639_v50  ;;  %v1884_v50 = vpop.f32.mrf.mxu0  ;;  %v1903_v6 = vpop.f32.mrf.mxu1  ;;  %v1493_v48 = vadd.f32 %v1478_v16, %v4623_v4  ;;  %v1629_v4 = vsel %vm559_vm2, %v1624_v13, %v1628_v51 }
 0x2a8   :  { %v1924_v39 = vrot.slane %v1884_v50, 4  ;;  %v1926_v29 = vrot.slane %v1903_v6, 4  ;;  %v1644_v13 = vadd.f32 %v1626_v11, %v1495_v3  ;;  %v3316_v50 = vld [vmem:[%s4900_s5 + $0xc0] sm:$0xff]  ;;  %v3299_v6 = vld [vmem:[%s4900_s5 + $0x38] sm:$0xff]  ;;  %v3293_v3 = vld [vmem:[%s4900_s5 + $0x8] sm:$0xff] }
 0x2a9   :  { %v1936_v63 = vadd.f32 %v1916_v5, %v1787_v52  ;;  %v1937_v8 = vadd.f32 %v1919_v28, %v1788_v18  ;;  %v1645_v18 = vadd.f32 %v1628_v51, %v1496_v12  ;;  %v1643_v28 = vadd.f32 %v1629_v4, %v1494_v41  ;;  %2345 = vmatpush.bf16.msrb.mxu0 %v3316_v50  ;;  %v3314_v41 = vld [vmem:[%s4900_s5 + $0xb0] sm:$0xff]  ;;  %v3312_v4 = vld [vmem:[%s4900_s5 + $0xa0] sm:$0xff] }
 0x2aa   :  { %v1642_v58 = vadd.f32 %v1627_v37, %v1493_v48  ;;  %v1925_v57 = vsel %vm979_vm4, %v1920_v49, %v1924_v39  ;;  %v1927_v11 = vsel %vm979_vm4, %v1922_v1, %v1926_v29  ;;  %v3315_v48 = vld [vmem:[%s4900_s5 + $0xb8] sm:$0xff]  ;;  %v3298_v12 = vld [vmem:[%s4900_s5 + $0x30] sm:$0xff] }
 0x2ab   :  { %v1733_v55 = vpop.f32.mrf.mxu2  ;;  %v1752_v40 = vpop.f32.mrf.mxu3  ;;  %v1953_v2 = vadd.f32 %v4674_v47, %v1937_v8  ;;  %v1952_v43 = vadd.f32 %v4676_v17, %v1936_v63  ;;  %v3311_v37 = vld [vmem:[%s4900_s5 + $0x98] sm:$0xff] }
 0x2ac   :  { %v1771_v24 = vrot.slane %v1733_v55, 3  ;;  %v1773_v45 = vrot.slane %v1752_v40, 3 }
 0x2ad   :  { %v1961_v56 = vmax.f32 %v1953_v2, 0.0  ;;  %v1960_v30 = vmax.f32 %v1952_v43, 0.0  ;;  %2346 = vmatpush.bf16.msrb.mxu0 %v3315_v48 }
 0x2ae   :  { %v1772_v36 = vsel %vm769_vm3, %v1766_v7, %v1771_v24  ;;  %v1774_v38 = vsel %vm769_vm3, %v1769_v59, %v1773_v45 }
 0x2af   :  { %v1789_v61 = vadd.f32 %v1772_v36, %v1640_v31  ;;  %v1790_v9 = vadd.f32 %v1774_v38, %v1641_v44  ;;  %v1975_v19 = vmul.f32 %v4692_v26, %v1961_v56  ;;  %v1974_v53 = vmul.f32 %v4694_v15, %v1960_v30 }
 0x2b1   :  { %v1938_v42 = vadd.f32 %v1921_v35, %v1789_v61  ;;  %v1939_v7 = vadd.f32 %v1923_v21, %v1790_v9  ;;  %v1989_v59 = vadd.f32 %v4698_v46, %v1975_v19  ;;  %v4720_v27 = vadd.f32 %v4700_v14, %v1974_v53  ;;  %v3301_v19 = vld [vmem:[%s4900_s5 + $0x48] sm:$0xff]  ;;  %v3295_v53 = vld [vmem:[%s4900_s5 + $0x18] sm:$0xff]  ;;  %2347 = vmatpush.bf16.msrb.mxu0 %v3314_v41 }
 0x2b2   :  { %2153 = vmatpush.bf16.msrb.mxu3 %v3301_v19 }
 0x2b3   :  { %2006 = vrot.lane.b32.xlu2 %v1989_v59, %s3350_s4  ;;  %v1754_v0 = vpop.f32.mrf.mxu3  ;;  %2004 = vrot.lane.b32.xlu1 %v4720_v27, %s3350_s4  ;;  %v1735_v52 = vpop.f32.mrf.mxu2  ;;  %v1955_v32 = vadd.f32 %v4674_v47, %v1939_v7  ;;  %v1954_v60 = vadd.f32 %v4676_v17, %v1938_v42  ;;  %v3313_v42 = vld [vmem:[%s4900_s5 + $0xa8] sm:$0xff]  ;;  %v3306_v59 = vld [vmem:[%s4900_s5 + $0x70] sm:$0xff] }
 0x2b4   :  { %v1777_v34 = vrot.slane %v1754_v0, 3  ;;  %v1775_v5 = vrot.slane %v1735_v52, 3  ;;  %v3297_v7 = vld [vmem:[%s4900_s5 + $0x28] sm:$0xff] }
 0x2b5   :  { %v1963_v25 = vmax.f32 %v1955_v32, 0.0  ;;  %v1962_v20 = vmax.f32 %v1954_v60, 0.0  ;;  %2348 = vmatpush.bf16.msrb.mxu0 %v3313_v42  ;;  %v3305_v52 = vld [vmem:[%s4900_s5 + $0x68] sm:$0xff]  ;;  %v3310_v32 = vld [vmem:[%s4900_s5 + $0x90] sm:$0xff] }
 0x2b6   :  { %v1778_v23 = vsel %vm769_vm3, %v1773_v45, %v1777_v34  ;;  %v1794_v63 = vadd.f32 %v1777_v34, %v1645_v18  ;;  %v1776_v8 = vsel %vm769_vm3, %v1771_v24, %v1775_v5  ;;  %v1793_v31 = vadd.f32 %v1775_v5, %v1644_v13  ;;  %v3304_v18 = vld [vmem:[%s4900_s5 + $0x60] sm:$0xff]  ;;  %v3309_v34 = vld [vmem:[%s4900_s5 + $0x88] sm:$0xff]  ;;  %v3303_v5 = vld [vmem:[%s4900_s5 + $0x58] sm:$0xff] }
 0x2b7   :  { %v1792_v55 = vadd.f32 %v1778_v23, %v1643_v28  ;;  %v1791_v44 = vadd.f32 %v1776_v8, %v1642_v58  ;;  %v1977_v10 = vmul.f32 %v4692_v26, %v1963_v25  ;;  %v1976_v51 = vmul.f32 %v4694_v15, %v1962_v20  ;;  %v3302_v23 = vld [vmem:[%s4900_s5 + $0x50] sm:$0xff] }
 0x2b8   :  { %v1942_v40 = vadd.f32 %v1924_v39, %v1793_v31  ;;  %v1943_v16 = vadd.f32 %v1926_v29, %v1794_v63  ;;  %v3307_v63 = vld [vmem:[%s4900_s5 + $0x78] sm:$0xff] }
 0x2b9   :  { %v1941_v2 = vadd.f32 %v1927_v11, %v1792_v55  ;;  %v1940_v43 = vadd.f32 %v1925_v57, %v1791_v44  ;;  %v1991_v24 = vadd.f32 %v4698_v46, %v1977_v10  ;;  %v4753_v45 = vadd.f32 %v4700_v14, %v1976_v51  ;;  %2349 = vmatpush.bf16.msrb.mxu0 %v3312_v4 }
 0x2ba   :  { %v1958_v22 = vadd.f32 %v4676_v17, %v1942_v40  ;;  %v1959_v30 = vadd.f32 %v4674_v47, %v1943_v16 }
 0x2bb   :  { %2010 = vrot.lane.b32.xlu1 %v1991_v24, %s3350_s4  ;;  %2008 = vrot.lane.b32.xlu0 %v4753_v45, %s3350_s4  ;;  %v1957_v33 = vadd.f32 %v4674_v47, %v1941_v2  ;;  %v1956_v62 = vadd.f32 %v4676_v17, %v1940_v43 }
 0x2bc   :  { %v1966_v49 = vmax.f32 %v1958_v22, 0.0  ;;  %v1967_v17 = vmax.f32 %v1959_v30, 0.0 }
 0x2bd   :  { %v1965_v1 = vmax.f32 %v1957_v33, 0.0  ;;  %v1964_v56 = vmax.f32 %v1956_v62, 0.0 }
 0x2be   :  { %v1980_v35 = vmul.f32 %v4694_v15, %v1966_v49  ;;  %v1981_v47 = vmul.f32 %v4692_v26, %v1967_v17 }
 0x2bf   :  { %v1979_v21 = vmul.f32 %v4692_v26, %v1965_v1  ;;  %v1978_v36 = vmul.f32 %v4694_v15, %v1964_v56  ;;  %v3300_v26 = vld [vmem:[%s4900_s5 + $0x40] sm:$0xff] }
 0x2c0   :  { %v4766_v38 = vadd.f32 %v4700_v14, %v1980_v35  ;;  %v1995_v15 = vadd.f32 %v4698_v46, %v1981_v47  ;;  %2154 = vmatpush.bf16.msrb.mxu3 %v3300_v26 }
 0x2c1   :  { %v1993_v61 = vadd.f32 %v4698_v46, %v1979_v21  ;;  %v4770_v9 = vadd.f32 %v4700_v14, %v1978_v36  ;;  %v3296_v14 = vld [vmem:[%s4900_s5 + $0x20] sm:$0xff]  ;;  %v3294_v46 = vld [vmem:[%s4900_s5 + $0x10] sm:$0xff] }
 0x2c2   :  { %2098 = vmatpush.bf16.msrb.mxu2 %v3296_v14 }
 0x2c3   :  { %2014 = vrot.lane.b32.xlu0 %v1993_v61, %s3350_s4  ;;  %2016 = vrot.lane.b32.xlu1 %v4766_v38, %s3350_s4 }
 0x2c4   :  { %2012 = vrot.lane.b32.xlu2 %v4770_v9, %s3350_s4  ;;  %2155 = vmatpush.bf16.msrb.mxu3 %v3299_v6 }
 0x2c6   :  { %2099 = vmatpush.bf16.msrb.mxu2 %v3295_v53 }
 0x2c8   :  { %2156 = vmatpush.bf16.msrb.mxu3 %v3298_v12 }
 0x2ca   :  { %2100 = vmatpush.bf16.msrb.mxu2 %v3294_v46 }
 0x2cc   :  { %2018 = vrot.lane.b32.xlu2 %v1995_v15, %s3350_s4  ;;  %2157 = vmatpush.bf16.msrb.mxu3 %v3297_v7 }
 0x2ce   :  { %2101 = vmatpush.bf16.msrb.mxu2 %v3293_v3 }
 0x2d0   :  { %2281 = vmatpush.bf16.msra.mxu3 %v3311_v37 }
 0x2d2   :  { %2102 = vmatpush.bf16.msrb.mxu2 %v3292_v54 }
 0x2d4   :  { %2282 = vmatpush.bf16.msra.mxu3 %v3310_v32 }
 0x2d6   :  { %2217 = vmatpush.bf16.msra.mxu2 %v3306_v59  ;;  %v3321_v59 = vld [vmem:[%s4901_s6] ss:$0 sm:$0xff]  ;;  %s2410_s6 = sshll.u32 %s4903_s8, 4  ;;  %s2411_s6 = int_to_ptr.hbm [resolvable:$true] %s2410_s6 }
 0x2d8   :  { %2283 = vmatpush.bf16.msra.mxu3 %v3309_v34 }
 0x2da   :  { %2218 = vmatpush.bf16.msra.mxu2 %v3305_v52 }
 0x2de   :  { %2219 = vmatpush.bf16.msra.mxu2 %v3304_v18 }
 0x2e2   :  { %2220 = vmatpush.bf16.msra.mxu2 %v3303_v5 }
 0x2e6   :  { %2221 = vmatpush.bf16.msra.mxu2 %v3302_v23 }
 0x30d   :  { %v2007_v39 = vpop.permute.xlu2 %2006 }
 0x31e   :  { %v2013_v13 = vpop.permute.xlu2 %2012 }
 0x325   :  { %v2005_v29 = vpop.permute.xlu1 %2004 }
 0x326   :  { %v2021_v0 = vsel %vm2020_vm10, %v2005_v29, %v2007_v39  ;;  %v2019_v8 = vpop.permute.xlu2 %2018  ;;  %v2380_v29 = vlaneseq }
 0x327   :  { %v2029_v60 = vmax.f32 %v4720_v27, %v2021_v0  ;;  %v3308_v27 = vld [vmem:[%s4900_s5 + $0x80] sm:$0xff] }
 0x328   :  { %2284 = vmatpush.bf16.msra.mxu3 %v3308_v27  ;;  %v2381_v0 = vand.u32 127, %v2380_v29 }
 0x329   :  { %2034 = vst.msk [vmem:[#allocation3] sm:$0xff] %vm2033_vm11, %v2029_v60 }
 0x32c   :  { %2285 = vmatpush.bf16.msra.mxu3 %v3307_v63 }
 0x32d   :  { %v2011_v28 = vpop.permute.xlu1 %2010  ;;  %v2009_v58 = vpop.permute.xlu0 %2008 }
 0x32e   :  { %v2022_v25 = vsel %vm2020_vm10, %v2009_v58, %v2011_v28 }
 0x32f   :  { %v2030_v20 = vmax.f32 %v4753_v45, %v2022_v25 }
 0x331   :  { %2035 = vst.msk [vmem:[#allocation3 + $0x8] sm:$0xff] %vm2033_vm11, %v2030_v20 }
 0x335   :  { %v2015_v31 = vpop.permute.xlu0 %2014  ;;  %v2017_v55 = vpop.permute.xlu1 %2016 }
 0x336   :  { %v2023_v44 = vsel %vm2020_vm10, %v2013_v13, %v2015_v31  ;;  %v2024_v10 = vsel %vm2020_vm10, %v2017_v55, %v2019_v8 }
 0x337   :  { %v2031_v51 = vmax.f32 %v4770_v9, %v2023_v44  ;;  %v2032_v57 = vmax.f32 %v4766_v38, %v2024_v10 }
 0x338   :  { %v2040_v11 = vld [vmem:[#allocation3] ss:$2 sm:$0xff]  ;;  %v2044_v40 = vld [vmem:[#allocation3 + $0x1] ss:$2 sm:$0xff] }
 0x339   :  { %2036 = vst.msk [vmem:[#allocation3 + $0x10] sm:$0xff] %vm2033_vm11, %v2031_v51  ;;  %v2047_v2 = vmax.f32 %v2040_v11, %v2044_v40 }
 0x33a   :  { %2038 = vst.msk [vmem:[#allocation3 + $0x18] sm:$0xf] %vm2037_vm9, %v2032_v57 }
 0x33b   :  { %2049 = vst.msk [vmem:[%s4902_s7] sm:$0xff] %vm2033_vm11, %v2047_v2 }
 0x341   :  { %v2042_v43 = vld [vmem:[#allocation3 + $0x10] ss:$2 sm:$0xff]  ;;  %v2046_v24 = vld [vmem:[#allocation3 + $0x11] ss:$2 sm:$0xff] }
 0x342   :  { %v2048_v45 = vmax.f32 %v2042_v43, %v2046_v24 }
 0x344   :  { %2050 = vst.msk [vmem:[%s4902_s7 + $0x8] sm:$0xff] %vm2033_vm11, %v2048_v45  ;;  %v2051_v16 = vpack.c.bf16 %v2048_v45, %v2047_v2 }
 0x346   :  { %3053 = vmatmul.msk.bf16.vlgmr.msrb.gmra.mxu2 %vm2033_vm11, %v2051_v16  ;;  %3084 = vmatmul.msk.bf16.vlgmr.msrb.gmra.mxu3 %vm2033_vm11, %v2051_v16 }
 0x347   :  { %3177 = vmatmul.msk.bf16.vlgmr.msrb.gmra.mxu0 %vm2033_vm11, %v2051_v16 }
 0x356   :  { %3115 = vmatmul.msk.bf16.vlgmr.msra.gmra.mxu2 %vm2033_vm11, %v2051_v16  ;;  %3146 = vmatmul.msk.bf16.vlgmr.msra.gmra.mxu3 %vm2033_vm11, %v2051_v16 }
 0x3c4   :  { %v2351_v1 = vpop.f32.mrf.mxu0 }
 0x3c5   :  { %v2358_v48 = vrot.slane %v2351_v1, 4 }
 0x3c9   :  { %v2104_v22 = vpop.f32.mrf.mxu2  ;;  %v2159_v33 = vpop.f32.mrf.mxu3 }
 0x3ca   :  { %v2166_v21 = vrot.slane %v2159_v33, 1 }
 0x3cc   :  { %v2353_v36 = vpop.f32.mrf.mxu0 }
 0x3cd   :  { %v2359_v53 = vrot.slane %v2353_v36, 4 }
 0x3cf   :  { %v2360_v42 = vsel %vm979_vm4, %v2358_v48, %v2359_v53 }
 0x3d1   :  { %v2106_v62 = vpop.f32.mrf.mxu2  ;;  %v2161_v49 = vpop.f32.mrf.mxu3 }
 0x3d2   :  { %v2167_v35 = vrot.slane %v2161_v49, 1 }
 0x3d4   :  { %v2168_v38 = vsel %vm349_vm1, %v2166_v21, %v2167_v35  ;;  %v2172_v17 = vadd.f32 %v2167_v35, %v2106_v62  ;;  %vm2399_vm1 = vcmask 1024  }
 0x3d5   :  { %v2171_v19 = vadd.f32 %v2168_v38, %v2104_v22 }
 0x3d9   :  { %v2223_v56 = vpop.f32.mrf.mxu2  ;;  %v2287_v30 = vpop.f32.mrf.mxu3 }
 0x3da   :  { %v2230_v47 = vrot.slane %v2223_v56, 2  ;;  %v2294_v26 = vrot.slane %v2287_v30, 3 }
 0x3e1   :  { %v2225_v61 = vpop.f32.mrf.mxu2  ;;  %v2289_v9 = vpop.f32.mrf.mxu3 }
 0x3e2   :  { %v2231_v15 = vrot.slane %v2225_v61, 2  ;;  %v2295_v14 = vrot.slane %v2289_v9, 3 }
 0x3e4   :  { %v2232_v46 = vsel %vm559_vm2, %v2230_v47, %v2231_v15  ;;  %v2236_v50 = vadd.f32 %v2231_v15, %v2172_v17  ;;  %v2296_v3 = vsel %vm769_vm3, %v2294_v26, %v2295_v14 }
 0x3e5   :  { %v2235_v6 = vadd.f32 %v2232_v46, %v2171_v19 }
 0x3e6   :  { %v2300_v41 = vadd.f32 %v2295_v14, %v2236_v50 }
 0x3e7   :  { %v2299_v12 = vadd.f32 %v2296_v3, %v2235_v6 }
 0x3e8   :  { %v2364_v54 = vadd.f32 %v2359_v53, %v2300_v41 }
 0x3e9   :  { %v2363_v7 = vadd.f32 %v2360_v42, %v2299_v12 }
 0x3ea   :  { %2368 = vst.msk [vmem:[#allocation4 + $0x8] sm:$0xf] %vm2367_vm12, %v2364_v54 }
 0x3eb   :  { %2366 = vst.msk [vmem:[#allocation4] sm:$0xff] %vm2365_vm13, %v2363_v7 }
 0x3f2   :  { %v2369_v37 = vld [vmem:[#allocation4] ss:$8 sm:$0x3] }
 0x3f3   :  { %v2374_v4 = vadd.f32 %v3321_v59, %v2369_v37 }
 0x3f5   :  { %v2377_v39 = vsel %vm2375_vm14, %v2374_v4, -inf  ;;  %2376 = vst.msk [vmem:[#allocation5] sm:$0x3] %vm2375_vm14, %v2374_v4 }
 0x3f6   :  { %2378 = vmax.xlane.f32.xlu0 %v2377_v39  ;;  %2413 = dma.vmem_to_hbm [thread:$0]  %s2409_s24, 32, %s2411_s6, [#allocation6]  }
 0x469   :  { %v2379_v52 = vpop.xlane.xlu0 %2378 }
 0x46a   :  { %vm2382_vm15 = vcmp.eq.f32.partialorder %v2374_v4, %v2379_v52 }
 0x46b   :  { %v2383_v32 = vsel %vm2382_vm15, %v2381_v0, 3 }
 0x46c   :  { %v2384_v60 = vsel %vm2375_vm14, %v2383_v32, 2147483647 }
 0x46d   :  { %v2386_v18 = vshra.s32 %v2384_v60, 16  ;;  %v2385_v13 = vand.u32 65535, %v2384_v60 }
 0x46f   :  { %v2388_v34 = vcvt.s32.f32 %v2386_v18  ;;  %v2387_v27 = vcvt.s32.f32 %v2385_v13 }
 0x471   :  { %2389 = vmin.xlane.f32.xlu1 %v2388_v34 }
 0x4e4   :  { %v2390_v5 = vpop.xlane.xlu1 %2389 }
 0x4e5   :  { %vm2391_vm0 = vcmp.eq.f32.partialorder %v2388_v34, %v2390_v5  ;;  %v2396_v58 = vcvt.f32.s32 %v2390_v5 }
 0x4e6   :  { %v2392_v28 = vsel %vm2391_vm0, %v2387_v27, inf }
 0x4e7   :  { %2393 = vmin.xlane.f32.xlu2 %v2392_v28  ;;  %v2397_v20 = vshll.u32 %v2396_v58, 16 }
 0x55a   :  { %v2394_v25 = vpop.xlane.xlu2 %2393 }
 0x55b   :  { %v2395_v23 = vcvt.f32.s32 %v2394_v25 }
 0x55d   :  { %v2398_v63 = vadd.s32 %v2397_v20, %v2395_v23 }
 0x55f   :  { %2400 = vst.msk [vmem:[%s4904_s9] sm:$0x3] %vm2399_vm1, %v2398_v63 }
 0x560   :  { %3346 = dma.done.wait [#allocation6], 32  }
 0x561   :  { %3347 = vsyncadd [#allocation6], 4294967264 }
 0x562   :  { %2424 = vsyncpa [#allocation6], 1 }

</bundles_post_ra>
